<compile_context>
chip_gen: v5e
topology: v5e:2x2
jax: 0.10.0
libtpu: 0.0.40
codegen_flags: <defaults>
</compile_context>

<pallas_src>
import math
from functools import partial

import jax
import jax.numpy as jnp
from jax import lax
from jax.experimental import pallas as pl
from jax.experimental.pallas import tpu as pltpu


# ----------------------------------------------------------------------------
# Static tiling helpers (Python ints, evaluated at trace time).
# ----------------------------------------------------------------------------
def _choose_freq_tile(tp_total, c_in, c_out, weight_budget_bytes=2 * 1024 * 1024):
    """Largest divisor of tp_total whose (tile, C_in, C_out) f32 weight tile
    stays under `weight_budget_bytes` per real/imag part."""
    best = 1
    for t in range(1, tp_total + 1):
        if tp_total % t == 0 and t * c_in * c_out * 4 <= weight_budget_bytes:
            best = t
    return best


def _choose_spatial_tile(s_total, max_tile=2048):
    """Largest 128-multiple divisor of s_total that is <= max_tile (lane-dense
    output stores).  Falls back to the full spatial extent otherwise."""
    for t in range(max_tile, 0, -128):
        if s_total % t == 0:
            return t
    # TODO(synk): spatial sizes that are not a multiple of 128 fall back to a
    # single full-S block; pad H*W to a 128 multiple upstream for huge grids.
    return s_total


# ----------------------------------------------------------------------------
# Kernel A: spectral mode contraction on the MXU.
#   out[p, b, o] = sum_i x[p, i, b] * w[p, i, o]   (complex, split real/imag)
# p = flattened (corner, mode0, mode1) index, batched through dot_general.
# ----------------------------------------------------------------------------
def _spectral_kernel(xr_ref, xi_ref, wr_ref, wi_ref, or_ref, oi_ref):
    xr = xr_ref[...]            # (tp, C_in, B)
    xi = xi_ref[...]
    wr = wr_ref[...]            # (tp, C_in, C_out)
    wi = wi_ref[...]
    dn = (((1,), (1,)), ((0,), (0,)))   # contract C_in; batch over frequency
    # 3-matmul complex product (instead of 4 MXU passes):
    #   k1 = (xr+xi)·wr ; k2 = xi·(wr+wi) ; k3 = xr·(wi-wr)
    #   real = k1 - k2 ;   imag = k1 + k3
    k1 = lax.dot_general(xr + xi, wr, dn, preferred_element_type=jnp.float32)
    k2 = lax.dot_general(xi, wr + wi, dn, preferred_element_type=jnp.float32)
    k3 = lax.dot_general(xr, wi - wr, dn, preferred_element_type=jnp.float32)
    or_ref[...] = k1 - k2       # (tp, B, C_out)
    oi_ref[...] = k1 + k3


def spectral_contract(xr, xi, wr, wi):
    TP, C_in, B = xr.shape
    C_out = wr.shape[2]
    tp = _choose_freq_tile(TP, C_in, C_out)
    grid = (TP // tp,)
    out_sd = jax.ShapeDtypeStruct((TP, B, C_out), jnp.float32)

    per_step_bytes = 4 * tp * (2 * C_in * B + 2 * C_in * C_out + 2 * B * C_out)
    vmem_limit = int(min(64 * 2**20, max(16 * 2**20, 4 * per_step_bytes)))

    flops = 3 * 2 * TP * B * C_in * C_out + 4 * TP * B * C_out
    bytes_accessed = 4 * (2 * TP * C_in * B + 2 * TP * C_in * C_out
                          + 2 * TP * B * C_out)

    return pl.pallas_call(
        _spectral_kernel,
        out_shape=(out_sd, out_sd),
        grid=grid,
        in_specs=[
            pl.BlockSpec((tp, C_in, B), lambda p: (p, 0, 0)),
            pl.BlockSpec((tp, C_in, B), lambda p: (p, 0, 0)),
            pl.BlockSpec((tp, C_in, C_out), lambda p: (p, 0, 0)),
            pl.BlockSpec((tp, C_in, C_out), lambda p: (p, 0, 0)),
        ],
        out_specs=(
            pl.BlockSpec((tp, B, C_out), lambda p: (p, 0, 0)),
            pl.BlockSpec((tp, B, C_out), lambda p: (p, 0, 0)),
        ),
        compiler_params=pltpu.CompilerParams(
            dimension_semantics=("parallel",),
            vmem_limit_bytes=vmem_limit),
        cost_estimate=pl.CostEstimate(
            flops=int(flops), transcendentals=0,
            bytes_accessed=int(bytes_accessed)),
    )(xr, xi, wr, wi)


# ----------------------------------------------------------------------------
# Kernel B: fused epilogue  out = gelu( x_fno + bias + W_skip @ x )
# (skip 1x1 conv fused; exact erf GELU; bias is a resident (C_out,1) VMEM block)
# ----------------------------------------------------------------------------
def _combine_kernel(x_ref, w_ref, fno_ref, bias_ref, o_ref, *, apply_gelu):
    # x_ref: (1, C_in, ts); w_ref: (C_out, C_in); fno_ref/o_ref: (1, C_out, ts);
    # bias_ref: (C_out, 1), constant index_map -> resident across the grid.
    skip = jnp.dot(w_ref[...], x_ref[0], preferred_element_type=jnp.float32)
    v = fno_ref[0] + skip + bias_ref[...]
    if apply_gelu:
        # Exact-erf GELU (matches torch.nn.functional.gelu default).
        v = 0.5 * v * (1.0 + lax.erf(v * (1.0 / math.sqrt(2.0))))
    o_ref[0] = v


def combine(x_flat, w_skip, x_fno_flat, bias_col, apply_gelu):
    B, C_in, S = x_flat.shape
    C_out = w_skip.shape[0]
    ts = _choose_spatial_tile(S)
    grid = (B, S // ts)

    per_step_bytes = 4 * (C_in * ts + 2 * C_out * ts + C_out * C_in + C_out)
    vmem_limit = int(min(64 * 2**20, max(16 * 2**20, 4 * per_step_bytes)))

    flops = 2 * B * C_out * C_in * S + 2 * B * C_out * S
    transcendentals = B * C_out * S if apply_gelu else 0
    bytes_accessed = 4 * (B * C_in * S + 2 * B * C_out * S + C_out * C_in + C_out)

    return pl.pallas_call(
        partial(_combine_kernel, apply_gelu=apply_gelu),
        out_shape=jax.ShapeDtypeStruct((B, C_out, S), jnp.float32),
        grid=grid,
        in_specs=[
            pl.BlockSpec((1, C_in, ts), lambda b, s: (b, 0, s)),
            pl.BlockSpec((C_out, C_in), lambda b, s: (0, 0)),
            pl.BlockSpec((1, C_out, ts), lambda b, s: (b, 0, s)),
            pl.BlockSpec((C_out, 1), lambda b, s: (0, 0)),
        ],
        out_specs=pl.BlockSpec((1, C_out, ts), lambda b, s: (b, 0, s)),
        compiler_params=pltpu.CompilerParams(
            dimension_semantics=("parallel", "parallel"),
            vmem_limit_bytes=vmem_limit),
        cost_estimate=pl.CostEstimate(
            flops=int(flops), transcendentals=int(transcendentals),
            bytes_accessed=int(bytes_accessed)),
    )(x_flat, w_skip, x_fno_flat, bias_col)


# ----------------------------------------------------------------------------
# One-time (init-time) parameter layout preparation — keeps the per-call
# forward free of full-weight transposes / reshapes.
# ----------------------------------------------------------------------------
def prepare_params(w_spec_r, w_spec_i, bias):
    def prep(w):
        two, c_in, c_out, m0, m1 = w.shape
        # (2, C_in, C_out, m0, m1) -> (2*m0*m1, C_in, C_out), frequency-major.
        return jnp.transpose(w, (0, 3, 4, 1, 2)).reshape(
            two * m0 * m1, c_in, c_out).astype(jnp.float32)
    return prep(w_spec_r), prep(w_spec_i), bias.reshape(-1, 1).astype(jnp.float32)


# ----------------------------------------------------------------------------
# FNOBlocks.forward_with_postactivation (index=0) — glue + Pallas hot paths.
# ----------------------------------------------------------------------------
@partial(jax.jit, static_argnums=(5, 6))
def fno_block_forward(x, w_skip, wr_t, wi_t, bias_col, half_modes, apply_gelu):
    """x: (B, C_in, H, W) f32 NCHW.  wr_t/wi_t: (2*m0*m1, C_in, C_out)
    pre-transposed spectral weights.  bias_col: (C_out, 1).
    Returns (B, C_out, H, W) f32."""
    B, C_in, H, W = x.shape
    C_out = w_skip.shape[0]
    m0, m1 = half_modes
    assert H >= 2 * m0, "corner mode blocks would overlap (H < 2*m0)"
    TP = 2 * m0 * m1
    S = H * W
    Wf = W // 2 + 1

    # ---- SpectralConv: rfft2 -> mode contraction (Pallas / MXU) -> irfft2
    x_ft = jnp.fft.rfft2(x, norm="forward")                       # (B,C_in,H,Wf) c64
    modes = jnp.stack([x_ft[:, :, :m0, :m1], x_ft[:, :, H - m0:, :m1]], axis=2)
    # (B, C_in, 2, m0, m1) -> (TP, C_in, B): frequency-major (grid batch axis),
    # channel/batch on trailing full-extent dims -> no unaligned lane slicing.
    modes = jnp.transpose(modes, (2, 3, 4, 1, 0)).reshape(TP, C_in, B)
    xr = jnp.real(modes).astype(jnp.float32)
    xi = jnp.imag(modes).astype(jnp.float32)

    out_r, out_i = spectral_contract(xr, xi, wr_t, wi_t)          # (TP, B, C_out)
    out_c = lax.complex(out_r, out_i).reshape(2, m0, m1, B, C_out)
    out_c = jnp.transpose(out_c, (3, 4, 0, 1, 2))                 # (B,C_out,2,m0,m1)

    # Full spectrum via one concat + one pad (no zeros + scatters).
    mid = jnp.zeros((B, C_out, H - 2 * m0, m1), jnp.complex64)
    left = jnp.concatenate([out_c[:, :, 0], mid, out_c[:, :, 1]], axis=2)
    out_ft = jnp.pad(left, ((0, 0), (0, 0), (0, 0), (0, Wf - m1)))
    x_fno = jnp.fft.irfft2(out_ft, s=(H, W), norm="forward")      # (B,C_out,H,W)

    # ---- fused epilogue: gelu( x_fno + bias + Conv1x1_skip(x) )
    out = combine(x.reshape(B, C_in, S).astype(jnp.float32),
                  w_skip.astype(jnp.float32),
                  x_fno.reshape(B, C_out, S).astype(jnp.float32),
                  bias_col, apply_gelu)
    return out.reshape(B, C_out, H, W)


# ----------------------------------------------------------------------------
# Pure-JAX reference (mirrors the PyTorch math) for validation.
# ----------------------------------------------------------------------------
def ref_forward(x, w_skip, w_spec_c, bias, half_modes, apply_gelu):
    B, C_in, H, W = x.shape
    C_out = w_skip.shape[0]
    m0, m1 = half_modes
    skip = jnp.einsum("oi,bihw->bohw", w_skip, x)
    x_ft = jnp.fft.rfft2(x, norm="forward")
    out_ft = jnp.zeros((B, C_out, H, W // 2 + 1), jnp.complex64)
    out_ft = out_ft.at[:, :, :m0, :m1].set(
        jnp.einsum("bixy,ioxy->boxy", x_ft[:, :, :m0, :m1], w_spec_c[0]))
    out_ft = out_ft.at[:, :, H - m0:, :m1].set(
        jnp.einsum("bixy,ioxy->boxy", x_ft[:, :, H - m0:, :m1], w_spec_c[1]))
    x_fno = jnp.fft.irfft2(out_ft, s=(H, W), norm="forward") + bias[None, :, None, None]
    out = x_fno + skip
    if apply_gelu:
        out = 0.5 * out * (1.0 + jax.scipy.special.erf(out / math.sqrt(2.0)))
    return out


if __name__ == "__main__":
    # Module config: in_channels=4, out_channels=4, n_modes=(8,8), n_layers=2,
    # use_mlp=False, norm=None, fno_skip='linear'.  forward(x, index=0).
    B, C_in, C_out, H, W = 2, 4, 4, 16, 16
    n_modes = (8, 8)
    half_modes = (n_modes[0] // 2, n_modes[1] // 2)   # (4, 4)
    n_layers = 2
    index = 0
    apply_gelu = index < n_layers - 1                 # True (mlp is None)

    key = jax.random.PRNGKey(0)
    kx, kwr, kwi, kb, ks = jax.random.split(key, 5)

    x = jax.random.normal(kx, (B, C_in, H, W), dtype=jnp.float32)

    # SpectralConv params (dense, 2 corner-weights per layer); take layer 0's pair.
    scale = 1.0 / (C_in * C_out)
    w_all_r = scale * jax.random.normal(
        kwr, (2 * n_layers, C_in, C_out, *half_modes), dtype=jnp.float32)
    w_all_i = scale * jax.random.normal(
        kwi, (2 * n_layers, C_in, C_out, *half_modes), dtype=jnp.float32)
    w_spec_r = w_all_r[2 * index:2 * index + 2]       # (2, C_in, C_out, m0, m1)
    w_spec_i = w_all_i[2 * index:2 * index + 2]
    bias_all = scale * jax.random.normal(kb, (n_layers, C_out), dtype=jnp.float32)
    bias = bias_all[index]                            # (C_out,)

    # fno_skips[index]: Conv2d(C_in, C_out, 1, bias=False) weight (squeezed).
    w_skip_all = (1.0 / math.sqrt(C_in)) * jax.random.normal(
        ks, (n_layers, C_out, C_in), dtype=jnp.float32)
    w_skip = w_skip_all[index]

    # One-time parameter layout prep (outside the jitted per-call forward).
    wr_t, wi_t, bias_col = prepare_params(w_spec_r, w_spec_i, bias)

    out = fno_block_forward(x, w_skip, wr_t, wi_t, bias_col,
                            half_modes, apply_gelu)
    jax.block_until_ready(out)

    # Validate against the pure-JAX reference of the PyTorch math.
    w_spec_c = lax.complex(w_spec_r, w_spec_i)
    ref = ref_forward(x, w_skip, w_spec_c, bias, half_modes, apply_gelu)
    err = float(jnp.max(jnp.abs(out - ref)))
    if not (err < 1e-3):
        raise AssertionError(f"mismatch vs reference: max abs err = {err}")

    # TODO(synk): SubModule/get_block and set_ada_in_embeddings (ada_in norm) are
    # module plumbing unused by this default forward path and are not translated.
    print("KERNEL_OK")
</pallas_src>

<mosaic_0001>
module attributes {stable_mosaic.version = 11 : i64} {
  func.func @_spectral_kernel(%arg0: i32, %arg1: memref<32x4x2xf32, #tpu.memory_space<vmem>>, %arg2: memref<32x4x2xf32, #tpu.memory_space<vmem>>, %arg3: memref<32x4x4xf32, #tpu.memory_space<vmem>>, %arg4: memref<32x4x4xf32, #tpu.memory_space<vmem>>, %arg5: memref<32x2x4xf32, #tpu.memory_space<vmem>>, %arg6: memref<32x2x4xf32, #tpu.memory_space<vmem>>) attributes {dimension_semantics = [#tpu.dimension_semantics<parallel>], iteration_bounds = array<i64: 1>, scalar_prefetch = 0 : i64, scratch_operands = 0 : i64, tpu.core_type = #tpu.core_type<tc>, window_params = [{transform_indices = @transform_0, window_bounds = array<i64: 32, 4, 2>}, {transform_indices = @transform_1, window_bounds = array<i64: 32, 4, 2>}, {transform_indices = @transform_2, window_bounds = array<i64: 32, 4, 4>}, {transform_indices = @transform_3, window_bounds = array<i64: 32, 4, 4>}, {transform_indices = @transform_4, window_bounds = array<i64: 32, 2, 4>}, {transform_indices = @transform_5, window_bounds = array<i64: 32, 2, 4>}]} {
    %c0 = arith.constant 0 : index
    %c0_0 = arith.constant 0 : index
    %c0_1 = arith.constant 0 : index
    %0 = vector.load %arg1[%c0, %c0_0, %c0_1] : memref<32x4x2xf32, #tpu.memory_space<vmem>>, vector<32x4x2xf32>
    %c0_2 = arith.constant 0 : index
    %c0_3 = arith.constant 0 : index
    %c0_4 = arith.constant 0 : index
    %1 = vector.load %arg2[%c0_2, %c0_3, %c0_4] : memref<32x4x2xf32, #tpu.memory_space<vmem>>, vector<32x4x2xf32>
    %c0_5 = arith.constant 0 : index
    %c0_6 = arith.constant 0 : index
    %c0_7 = arith.constant 0 : index
    %2 = vector.load %arg3[%c0_5, %c0_6, %c0_7] : memref<32x4x4xf32, #tpu.memory_space<vmem>>, vector<32x4x4xf32>
    %c0_8 = arith.constant 0 : index
    %c0_9 = arith.constant 0 : index
    %c0_10 = arith.constant 0 : index
    %3 = vector.load %arg4[%c0_8, %c0_9, %c0_10] : memref<32x4x4xf32, #tpu.memory_space<vmem>>, vector<32x4x4xf32>
    %4 = arith.addf %0, %1 : vector<32x4x2xf32>
    %cst = arith.constant dense<0.000000e+00> : vector<32x2x4xf32>
    %5 = tpu.matmul %4, %2, %cst {dimension_numbers = #tpu.dot_dimension_numbers<[1], [1], [2], [2], [0, 0, 0, 2, 1, 2], [0], [0]>} : vector<32x4x2xf32>, vector<32x4x4xf32>, vector<32x2x4xf32> -> vector<32x2x4xf32>
    %6 = arith.addf %2, %3 : vector<32x4x4xf32>
    %cst_11 = arith.constant dense<0.000000e+00> : vector<32x2x4xf32>
    %7 = tpu.matmul %1, %6, %cst_11 {dimension_numbers = #tpu.dot_dimension_numbers<[1], [1], [2], [2], [0, 0, 0, 2, 1, 2], [0], [0]>} : vector<32x4x2xf32>, vector<32x4x4xf32>, vector<32x2x4xf32> -> vector<32x2x4xf32>
    %8 = arith.subf %3, %2 : vector<32x4x4xf32>
    %cst_12 = arith.constant dense<0.000000e+00> : vector<32x2x4xf32>
    %9 = tpu.matmul %0, %8, %cst_12 {dimension_numbers = #tpu.dot_dimension_numbers<[1], [1], [2], [2], [0, 0, 0, 2, 1, 2], [0], [0]>} : vector<32x4x2xf32>, vector<32x4x4xf32>, vector<32x2x4xf32> -> vector<32x2x4xf32>
    %10 = arith.subf %5, %7 : vector<32x2x4xf32>
    %c0_13 = arith.constant 0 : index
    %c0_14 = arith.constant 0 : index
    %c0_15 = arith.constant 0 : index
    %11 = vector.load %arg5[%c0_13, %c0_14, %c0_15] : memref<32x2x4xf32, #tpu.memory_space<vmem>>, vector<32x2x4xf32>
    tpu.vector_store %arg5[%c0_13, %c0_14, %c0_15], %10 {strides = array<i32>} : memref<32x2x4xf32, #tpu.memory_space<vmem>>, vector<32x2x4xf32>,
    %12 = arith.addf %5, %9 : vector<32x2x4xf32>
    %c0_16 = arith.constant 0 : index
    %c0_17 = arith.constant 0 : index
    %c0_18 = arith.constant 0 : index
    %13 = vector.load %arg6[%c0_16, %c0_17, %c0_18] : memref<32x2x4xf32, #tpu.memory_space<vmem>>, vector<32x2x4xf32>
    tpu.vector_store %arg6[%c0_16, %c0_17, %c0_18], %12 {strides = array<i32>} : memref<32x2x4xf32, #tpu.memory_space<vmem>>, vector<32x2x4xf32>,
    return
  }
  func.func @transform_0(%arg0: i32) -> (i32, i32, i32) {
    %c0_i32 = arith.constant 0 : i32
    %c0_i32_0 = arith.constant 0 : i32
    %c0_i32_1 = arith.constant 0 : i32
    return %arg0, %c0_i32, %c0_i32_0 : i32, i32, i32
  }
  func.func @transform_1(%arg0: i32) -> (i32, i32, i32) {
    %c0_i32 = arith.constant 0 : i32
    %c0_i32_0 = arith.constant 0 : i32
    %c0_i32_1 = arith.constant 0 : i32
    return %arg0, %c0_i32, %c0_i32_0 : i32, i32, i32
  }
  func.func @transform_2(%arg0: i32) -> (i32, i32, i32) {
    %c0_i32 = arith.constant 0 : i32
    %c0_i32_0 = arith.constant 0 : i32
    %c0_i32_1 = arith.constant 0 : i32
    return %arg0, %c0_i32, %c0_i32_0 : i32, i32, i32
  }
  func.func @transform_3(%arg0: i32) -> (i32, i32, i32) {
    %c0_i32 = arith.constant 0 : i32
    %c0_i32_0 = arith.constant 0 : i32
    %c0_i32_1 = arith.constant 0 : i32
    return %arg0, %c0_i32, %c0_i32_0 : i32, i32, i32
  }
  func.func @transform_4(%arg0: i32) -> (i32, i32, i32) {
    %c0_i32 = arith.constant 0 : i32
    %c0_i32_0 = arith.constant 0 : i32
    %c0_i32_1 = arith.constant 0 : i32
    return %arg0, %c0_i32, %c0_i32_0 : i32, i32, i32
  }
  func.func @transform_5(%arg0: i32) -> (i32, i32, i32) {
    %c0_i32 = arith.constant 0 : i32
    %c0_i32_0 = arith.constant 0 : i32
    %c0_i32_1 = arith.constant 0 : i32
    return %arg0, %c0_i32, %c0_i32_0 : i32, i32, i32
  }
}

module attributes {stable_mosaic.version = 11 : i64} {
  func.func @_combine_kernel(%arg0: i32, %arg1: i32, %arg2: memref<1x4x256xf32, #tpu.memory_space<vmem>>, %arg3: memref<4x4xf32, #tpu.memory_space<vmem>>, %arg4: memref<1x4x256xf32, #tpu.memory_space<vmem>>, %arg5: memref<4x1xf32, #tpu.memory_space<vmem>>, %arg6: memref<1x4x256xf32, #tpu.memory_space<vmem>>) attributes {dimension_semantics = [#tpu.dimension_semantics<parallel>, #tpu.dimension_semantics<parallel>], iteration_bounds = array<i64: 2, 1>, scalar_prefetch = 0 : i64, scratch_operands = 0 : i64, tpu.core_type = #tpu.core_type<tc>, window_params = [{transform_indices = @transform_0, window_bounds = array<i64: 1, 4, 256>}, {pipeline_mode = #tpu.pipeline_mode<synchronous>, transform_indices = @transform_1, window_bounds = array<i64: 4, 4>}, {transform_indices = @transform_2, window_bounds = array<i64: 1, 4, 256>}, {pipeline_mode = #tpu.pipeline_mode<synchronous>, transform_indices = @transform_3, window_bounds = array<i64: 4, 1>}, {transform_indices = @transform_4, window_bounds = array<i64: 1, 4, 256>}]} {
    %c0 = arith.constant 0 : index
    %c0_0 = arith.constant 0 : index
    %0 = vector.load %arg3[%c0, %c0_0] : memref<4x4xf32, #tpu.memory_space<vmem>>, vector<4x4xf32>
    %c0_1 = arith.constant 0 : index
    %c0_2 = arith.constant 0 : index
    %c0_3 = arith.constant 0 : index
    %1 = vector.load %arg2[%c0_1, %c0_2, %c0_3] : memref<1x4x256xf32, #tpu.memory_space<vmem>>, vector<1x4x256xf32>
    %2 = vector.shape_cast %1 : vector<1x4x256xf32> to vector<4x256xf32>
    %cst = arith.constant dense<0.000000e+00> : vector<4x256xf32>
    %3 = tpu.matmul %0, %2, %cst {dimension_numbers = #tpu.dot_dimension_numbers<[1], [0], [0], [1], [0, 0, 1, 1], [], []>} : vector<4x4xf32>, vector<4x256xf32>, vector<4x256xf32> -> vector<4x256xf32>
    %c0_4 = arith.constant 0 : index
    %c0_5 = arith.constant 0 : index
    %c0_6 = arith.constant 0 : index
    %4 = vector.load %arg4[%c0_4, %c0_5, %c0_6] : memref<1x4x256xf32, #tpu.memory_space<vmem>>, vector<1x4x256xf32>
    %5 = vector.shape_cast %4 : vector<1x4x256xf32> to vector<4x256xf32>
    %6 = arith.addf %5, %3 : vector<4x256xf32>
    %c0_7 = arith.constant 0 : index
    %c0_8 = arith.constant 0 : index
    %7 = vector.load %arg5[%c0_7, %c0_8] : memref<4x1xf32, #tpu.memory_space<vmem>>, vector<4x1xf32>
    %8 = vector.broadcast %7 : vector<4x1xf32> to vector<4x256xf32>
    %9 = arith.addf %6, %8 : vector<4x256xf32>
    %cst_9 = arith.constant 5.000000e-01 : f32
    %10 = vector.broadcast %cst_9 : f32 to vector<4x256xf32>
    %11 = arith.mulf %10, %9 : vector<4x256xf32>
    %cst_10 = arith.constant 0.707106769 : f32
    %12 = vector.broadcast %cst_10 : f32 to vector<4x256xf32>
    %13 = arith.mulf %9, %12 : vector<4x256xf32>
    %14 = math.erf %13 : vector<4x256xf32>
    %cst_11 = arith.constant 1.000000e+00 : f32
    %15 = vector.broadcast %cst_11 : f32 to vector<4x256xf32>
    %16 = arith.addf %15, %14 : vector<4x256xf32>
    %17 = arith.mulf %11, %16 : vector<4x256xf32>
    %c0_12 = arith.constant 0 : index
    %c0_13 = arith.constant 0 : index
    %c0_14 = arith.constant 0 : index
    %18 = vector.load %arg6[%c0_12, %c0_13, %c0_14] : memref<1x4x256xf32, #tpu.memory_space<vmem>>, vector<1x4x256xf32>
    %19 = vector.shape_cast %18 : vector<1x4x256xf32> to vector<4x256xf32>
    %20 = vector.shape_cast %17 : vector<4x256xf32> to vector<1x4x256xf32>
    tpu.vector_store %arg6[%c0_12, %c0_13, %c0_14], %20 {strides = array<i32>} : memref<1x4x256xf32, #tpu.memory_space<vmem>>, vector<1x4x256xf32>,
    return
  }
  func.func @transform_0(%arg0: i32, %arg1: i32) -> (i32, i32, i32) {
    %c0_i32 = arith.constant 0 : i32
    %c0_i32_0 = arith.constant 0 : i32
    return %arg0, %c0_i32, %arg1 : i32, i32, i32
  }
  func.func @transform_1(%arg0: i32, %arg1: i32) -> (i32, i32) {
    %c0_i32 = arith.constant 0 : i32
    %c0_i32_0 = arith.constant 0 : i32
    %c0_i32_1 = arith.constant 0 : i32
    return %c0_i32, %c0_i32_0 : i32, i32
  }
  func.func @transform_2(%arg0: i32, %arg1: i32) -> (i32, i32, i32) {
    %c0_i32 = arith.constant 0 : i32
    %c0_i32_0 = arith.constant 0 : i32
    return %arg0, %c0_i32, %arg1 : i32, i32, i32
  }
  func.func @transform_3(%arg0: i32, %arg1: i32) -> (i32, i32) {
    %c0_i32 = arith.constant 0 : i32
    %c0_i32_0 = arith.constant 0 : i32
    %c0_i32_1 = arith.constant 0 : i32
    return %c0_i32, %c0_i32_0 : i32, i32
  }
  func.func @transform_4(%arg0: i32, %arg1: i32) -> (i32, i32, i32) {
    %c0_i32 = arith.constant 0 : i32
    %c0_i32_0 = arith.constant 0 : i32
    return %arg0, %c0_i32, %arg1 : i32, i32, i32
  }
}

</mosaic_0001>

<bundles_post_ra>
// kernel: reverse.0
= control target key start
LH: loop header
LB: loop body
LE: loop exit
PB: predicated region body
PF: predicated region fallthrough
CT: control target
= control target key end

     0   :  { %v72_v3 = vlaneseq  ;;  %v65_v6 = vld [vmem:[#allocation0 + $0x7] ss:$-1 sm:$0xff]  ;;  %v79_v8 = vld [vmem:[#allocation0 + $0x17] ss:$-1 sm:$0xff]  ;;  %s331_s0 = inlined_call_operand.vmem [shape: f32[2,4,16,7], index: 0, kind: input, shape index: {}]   ;;  %s332_s1 = inlined_call_operand.vmem [shape: f32[2,4,16,7], index: 1, kind: output, shape index: {}]  }
   0x1   :  { %v45_v0 = vld [vmem:[%s331_s0] sm:$0xff]  ;;  %v47_v1 = vld [vmem:[%s331_s0 + $0x8] sm:$0xff]  ;;  %v49_v2 = vld [vmem:[%s331_s0 + $0x10] sm:$0xff]  ;;  %v66_v12 = vrot.slane %v65_v6, 1  ;;  %v80_v13 = vrot.slane %v79_v8, 1 }
   0x2   :  { %46 = vst [vmem:[#allocation0 + $0x8] sm:$0xff] %v45_v0  ;;  %v51_v4 = vld [vmem:[%s331_s0 + $0x18] sm:$0xff]  ;;  %v53_v5 = vld [vmem:[%s331_s0 + $0x20] sm:$0xff]  ;;  %v55_v7 = vld [vmem:[%s331_s0 + $0x28] sm:$0xff]  ;;  %v73_v10 = vshrl.u32 %v72_v3, 7 }
   0x3   :  { %48 = vst [vmem:[#allocation0 + $0x18] sm:$0xff] %v47_v1  ;;  %v57_v9 = vld [vmem:[%s331_s0 + $0x30] sm:$0xff]  ;;  %v59_v11 = vld [vmem:[%s331_s0 + $0x38] sm:$0xff]  ;;  %v93_v14 = vld [vmem:[#allocation0 + $0x27] ss:$-1 sm:$0xff] }
   0x4   :  { %50 = vst [vmem:[#allocation0 + $0x28] sm:$0xff] %v49_v2  ;;  %vm74_vm0 = vcmp.lt.s32.totalorder %v73_v10, 7  ;;  %v107_v16 = vld [vmem:[#allocation0 + $0x37] ss:$-1 sm:$0xff]  ;;  %v94_v19 = vrot.slane %v93_v14, 1 }
   0x5   :  { %52 = vst [vmem:[#allocation0 + $0x38] sm:$0xff] %v51_v4  ;;  %v121_v22 = vld [vmem:[#allocation0 + $0x47] ss:$-1 sm:$0xff]  ;;  %v108_v24 = vrot.slane %v107_v16, 1  ;;  %v135_v28 = vld [vmem:[#allocation0 + $0x57] ss:$-1 sm:$0xff] }
   0x6   :  { %54 = vst [vmem:[#allocation0 + $0x48] sm:$0xff] %v53_v5  ;;  %v122_v29 = vrot.slane %v121_v22, 1  ;;  %v149_v32 = vld [vmem:[#allocation0 + $0x67] ss:$-1 sm:$0xff]  ;;  %v136_v33 = vrot.slane %v135_v28, 1 }
   0x7   :  { %56 = vst [vmem:[#allocation0 + $0x58] sm:$0xff] %v55_v7  ;;  %v163_v36 = vld [vmem:[#allocation0 + $0x77] ss:$-1 sm:$0xff]  ;;  %v150_v37 = vrot.slane %v149_v32, 1 }
   0x8   :  { %58 = vst [vmem:[#allocation0 + $0x68] sm:$0xff] %v57_v9  ;;  %v164_v40 = vrot.slane %v163_v36, 1 }
   0x9   :  { %60 = vst [vmem:[#allocation0 + $0x78] sm:$0xff] %v59_v11  ;;  %v70_v15 = vld [vmem:[#allocation0 + $0xf] ss:$-1 sm:$0xff] }
   0xa   :  { %67 = vst [vmem:[#allocation1] sm:$0xff] %v66_v12  ;;  %v71_v17 = vrot.slane %v70_v15, 1  ;;  %v84_v18 = vld [vmem:[#allocation0 + $0x1f] ss:$-1 sm:$0xff] }
   0xb   :  { %81 = vst [vmem:[#allocation1 + $0x8] sm:$0xff] %v80_v13  ;;  %v85_v20 = vrot.slane %v84_v18, 1  ;;  %v98_v21 = vld [vmem:[#allocation0 + $0x2f] ss:$-1 sm:$0xff] }
   0xc   :  { %75 = vst.msk [vmem:[#allocation1] sm:$0xff] %vm74_vm0, %v71_v17  ;;  %v99_v23 = vrot.slane %v98_v21, 1  ;;  %v112_v25 = vld [vmem:[#allocation0 + $0x3f] ss:$-1 sm:$0xff] }
   0xd   :  { %89 = vst.msk [vmem:[#allocation1 + $0x8] sm:$0xff] %vm74_vm0, %v85_v20  ;;  %v113_v26 = vrot.slane %v112_v25, 1  ;;  %v126_v27 = vld [vmem:[#allocation0 + $0x4f] ss:$-1 sm:$0xff] }
   0xe   :  { %95 = vst [vmem:[#allocation1 + $0x10] sm:$0xff] %v94_v19  ;;  %v140_v30 = vld [vmem:[#allocation0 + $0x5f] ss:$-1 sm:$0xff]  ;;  %v127_v31 = vrot.slane %v126_v27, 1 }
   0xf   :  { %103 = vst.msk [vmem:[#allocation1 + $0x10] sm:$0xff] %vm74_vm0, %v99_v23  ;;  %v154_v34 = vld [vmem:[#allocation0 + $0x6f] ss:$-1 sm:$0xff]  ;;  %v141_v35 = vrot.slane %v140_v30, 1 }
  0x10   :  { %109 = vst [vmem:[#allocation1 + $0x18] sm:$0xff] %v108_v24  ;;  %v168_v38 = vld [vmem:[#allocation0 + $0x7f] ss:$-1 sm:$0xff]  ;;  %v155_v39 = vrot.slane %v154_v34, 1 }
  0x11   :  { %117 = vst.msk [vmem:[#allocation1 + $0x18] sm:$0xff] %vm74_vm0, %v113_v26  ;;  %v169_v41 = vrot.slane %v168_v38, 1 }
  0x12   :  { %123 = vst [vmem:[#allocation1 + $0x20] sm:$0xff] %v122_v29 }
  0x13   :  { %131 = vst.msk [vmem:[#allocation1 + $0x20] sm:$0xff] %vm74_vm0, %v127_v31  ;;  %v216_v42 = vld [vmem:[#allocation1] sm:$0xff] }
  0x14   :  { %137 = vst [vmem:[#allocation1 + $0x28] sm:$0xff] %v136_v33  ;;  %v218_v43 = vld [vmem:[#allocation1 + $0x8] sm:$0xff] }
  0x15   :  { %145 = vst.msk [vmem:[#allocation1 + $0x28] sm:$0xff] %vm74_vm0, %v141_v35 }
  0x16   :  { %151 = vst [vmem:[#allocation1 + $0x30] sm:$0xff] %v150_v37  ;;  %v220_v44 = vld [vmem:[#allocation1 + $0x10] sm:$0xff] }
  0x17   :  { %159 = vst.msk [vmem:[#allocation1 + $0x30] sm:$0xff] %vm74_vm0, %v155_v39 }
  0x18   :  { %165 = vst [vmem:[#allocation1 + $0x38] sm:$0xff] %v164_v40  ;;  %v222_v45 = vld [vmem:[#allocation1 + $0x18] sm:$0xff] }
  0x19   :  { %173 = vst.msk [vmem:[#allocation1 + $0x38] sm:$0xff] %vm74_vm0, %v169_v41 }
  0x1a   :  { %217 = vst [vmem:[%s332_s1] sm:$0xff] %v216_v42  ;;  %v224_v46 = vld [vmem:[#allocation1 + $0x20] sm:$0xff] }
  0x1b   :  { %219 = vst [vmem:[%s332_s1 + $0x8] sm:$0xff] %v218_v43 }
  0x1c   :  { %221 = vst [vmem:[%s332_s1 + $0x10] sm:$0xff] %v220_v44  ;;  %v226_v47 = vld [vmem:[#allocation1 + $0x28] sm:$0xff] }
  0x1d   :  { %223 = vst [vmem:[%s332_s1 + $0x18] sm:$0xff] %v222_v45 }
  0x1e   :  { %225 = vst [vmem:[%s332_s1 + $0x20] sm:$0xff] %v224_v46  ;;  %v228_v48 = vld [vmem:[#allocation1 + $0x30] sm:$0xff] }
  0x1f   :  { %227 = vst [vmem:[%s332_s1 + $0x28] sm:$0xff] %v226_v47 }
  0x20   :  { %229 = vst [vmem:[%s332_s1 + $0x30] sm:$0xff] %v228_v48  ;;  %v230_v49 = vld [vmem:[#allocation1 + $0x38] sm:$0xff] }
  0x21   :  { %231 = vst [vmem:[%s332_s1 + $0x38] sm:$0xff] %v230_v49 }

// kernel: fno_block_forward.3
= control target key start
LH: loop header
LB: loop body
LE: loop exit
PB: predicated region body
PF: predicated region fallthrough
CT: control target
= control target key end

     0   :  { %s597_s15 = smov 0   ;;  %s599_s16 = smov 0   ;;  %s647_s0 = inlined_call_operand.vmem [shape: f32[2,4,256], index: 0, kind: input, shape index: {}]   ;;  %s648_s1 = inlined_call_operand.vmem [shape: f32[4,4], index: 1, kind: input, shape index: {}]   ;;  %s649_s2 = inlined_call_operand.vmem [shape: f32[2,4,256], index: 2, kind: input, shape index: {}]   ;;  %s650_s3 = inlined_call_operand.vmem [shape: f32[4,1], index: 3, kind: input, shape index: {}]   ;;  %s651_s4 = inlined_call_operand.vmem [shape: f32[2,4,256], index: 4, kind: output, shape index: {}]  }
   0x1   :  { %s601_s17 = smov 0  }
   0x2 LB: > { %s26_s18 = sadd.s32 1, %s564_s16  ;;  %p500_p0 = scmp.ge.s32.totalorder %s568_s17, 1  ;;  %s568_s17 = sphi %s601_s17, %s14_s17   ;;  %s564_s16 = sphi %s599_s16, %s653_s16   ;;  %s560_s15 = sphi %s597_s15, %s652_s15  }
   0x3   : > { %p28_p1 = scmp.ge.s32.totalorder %s26_s18, 2  ;;  %p200_p2 = scmp.lt.s32.totalorder %s568_s17, 3 }
   0x5   : > { %s655_s18 = smov (%p28_p1, %s26_s18), 0  ;;  %p201_p3 = pnand %p500_p0, %p200_p2 }
   0x6   : > { %p244_p4 = scmp.lt.s32.totalorder (!%p201_p3), %s560_s15, 1 }
   0x7   : > { %204 = sbr.rel (%p201_p3) target bundleno = 210 (0xd2), region = 36 }
   0xc   : > { %v570_v0 = vmov 0   ;;  %v335_v1 = vld [vmem:[%s650_s3] sm:$0xf]  ;;  %s657_s15 = smov (!%p244_p4, %s560_s15), 1  ;;  %vm283_vm0 = vcmask 1043456   ;;  %vm279_vm1 = vcmask 31744  }
   0xd   : > { %543 = vset.pattern.permute.xlu0 %v570_v0  ;;  %s618_s21 = sshll.u32 %s657_s15, 3  ;;  %v273_v3 = vld [vmem:[%s648_s1] sm:$0xf]  ;;  %v571_v6 = vmov 839922192  }
   0xe   : > { %338 = vperm.xlu0 %543, %v335_v1   ;;  %s251_s24 = scalar_lea.vmem %s647_s0, %s618_s21  ;;  %v341_v7 = vunpack.c.l.s4 %v571_v6  ;;  %s261_s29 = scalar_lea.vmem %s649_s2, %s618_s21 }
   0xf   : > { %v274_v2 = vld [vmem:[%s251_s24] sm:$0xff]  ;;  %s271_s6 = scalar_lea.vmem %s651_s4, %s618_s21 }
  0x10   : > { %276 = vst [vmem:[#allocation1] ss:$2 sm:$0xff] %v274_v2  ;;  %v342_v8 = vunpack.c.0.s8 %v341_v7  ;;  %v328_v13 = vld [vmem:[%s261_s29] sm:$0xff] }
  0x17   : > { %v278_v4 = vld.sshfl [vmem:[#allocation1 + $0x8] sm:$0xff pattern:$0x75316420]  ;;  %v277_v5 = vld.sshfl [vmem:[#allocation1] sm:$0xff pattern:$0x75316420] }
  0x18   : > { %509 = vmatpush.msk.msra.mxu1 %vm283_vm0, %v278_v4  ;;  %507 = vmatpush.msk.msra.mxu0 %vm283_vm0, %v277_v5 }
  0x19   : > { %510 = vmatmul.msk.f32.vlgmr.msra.gmra.mxu1 %vm279_vm1, %v273_v3  ;;  %508 = vmatmul.msk.f32.vlgmr.msra.gmra.mxu0 %vm279_vm1, %v273_v3 }
  0x80   : > { %v339_v9 = vpop.permute.xlu0 %338 }
  0x81   : > { %v343_v14 = vperm.slane %v339_v9, %v342_v8 }
  0x96   : > { %v325_v10 = vpop.f32.mrf.mxu1  ;;  %v305_v11 = vpop.f32.mrf.mxu0 }
  0x97   : > { %v331_v12 = vrot.slane %v325_v10, 4 }
  0x99   : > { %v332_v15 = vsel %vm283_vm0, %v305_v11, %v331_v12 }
  0x9a   : > { %v334_v16 = vadd.f32 %v332_v15, %v328_v13 }
  0x9c   : > { %v345_v17 = vadd.f32 %v343_v14, %v334_v16 }
  0x9e   : > { %v347_v18 = vmul.f32 0.70710677, %v345_v17  ;;  %v346_v54 = vmul.f32 0.5, %v345_v17 }
  0xa0   : > { %v348_v19 = vmul.f32 %v347_v18, %v347_v18 }
  0xa2   : > { %v349_v20 = vmin.f32 %v348_v19, 16.0 }
  0xa4   : > { %v350_v21 = vmul.f32 2.1237322e-06, %v349_v20  ;;  %v361_v22 = vmul.f32 3.8918573e-05, %v349_v20 }
  0xa6   : > { %v351_v23 = vadd.f32 0.00028619796, %v350_v21  ;;  %v362_v24 = vadd.f32 0.001143296, %v361_v22 }
  0xa8   : > { %v352_v25 = vmul.f32 %v351_v23, %v349_v20  ;;  %v363_v26 = vmul.f32 %v362_v24, %v349_v20 }
  0xaa   : > { %v364_v27 = vadd.f32 0.014752088, %v363_v26  ;;  %v353_v28 = vadd.f32 0.0036580483, %v352_v25 }
  0xac   : > { %v365_v29 = vmul.f32 %v364_v27, %v349_v20  ;;  %v354_v31 = vmul.f32 %v353_v28, %v349_v20 }
  0xae   : > { %v366_v30 = vadd.f32 0.112945676, %v365_v29  ;;  %v355_v34 = vadd.f32 0.05243302, %v354_v31 }
  0xb0   : > { %v367_v32 = vmul.f32 %v366_v30, %v349_v20  ;;  %v356_v37 = vmul.f32 %v355_v34, %v349_v20 }
  0xb2   : > { %v368_v33 = vadd.f32 0.4994258, %v367_v32  ;;  %v357_v38 = vadd.f32 0.18741608, %v356_v37 }
  0xb4   : > { %v369_v35 = vmul.f32 %v368_v33, %v349_v20  ;;  %v358_v40 = vmul.f32 %v357_v38, %v349_v20 }
  0xb6   : > { %v370_v36 = vadd.f32 1.0, %v369_v35  ;;  %v359_v44 = vadd.f32 1.1283791, %v358_v40 }
  0xb8   : > { %544 = vrcp.f32 %v370_v36  ;;  %v382_v43 = vand.u32 2147483648, %v370_v36  ;;  %v380_v46 = vand.u32 2147483647, %v370_v36  ;;  %vm376_vm3 = vweird.f32 %v370_v36 }
  0xb9   : > { %v360_v49 = vmul.f32 %v359_v44, %v347_v18 }
  0xba   : > { %v383_v48 = vor.u32 1.1754944e-38, %v382_v43  ;;  %vm381_vm5 = vcmp.eq.f32.partialorder %v380_v46, 8.507059e+37 }
  0xbe   : > { %v545_v39 = vpop.eup %544 }
  0xbf   : > { %v372_v41 = vmul.f32 %v545_v39, %v370_v36  ;;  %vm377_vm2 = vweird.f32 %v545_v39 }
  0xc0   : > { %vm378_vm4 = vmor %vm376_vm3, %vm377_vm2 }
  0xc1   : > { %v373_v42 = vsub.f32 1.0, %v372_v41 }
  0xc3   : > { %v374_v45 = vmul.f32 %v545_v39, %v373_v42 }
  0xc5   : > { %v375_v47 = vadd.f32 %v545_v39, %v374_v45 }
  0xc7   : > { %v379_v50 = vsel %vm378_vm4, %v545_v39, %v375_v47 }
  0xc8   : > { %v384_v51 = vsel %vm381_vm5, %v383_v48, %v379_v50 }
  0xc9   : > { %v385_v52 = vmul.f32 %v384_v51, %v360_v49 }
  0xcb   : > { %v511_v53 = vclamps-f32 %v385_v52, 1.0 }
  0xcd   : > { %v388_v55 = vadd.f32 1.0, %v511_v53 }
  0xcf   : > { %v389_v56 = vmul.f32 %v388_v55, %v346_v54 }
  0xd1   : > { %390 = vst [vmem:[%s271_s6] sm:$0xff] %v389_v56 }
  0xd2 PF: > { %s14_s17 = sadd.s32 1, %s568_s17   ;;  %s652_s15 = smov %s564_s16 }
  0xd3   : > { %p11_p5 = scmp.ge.s32.totalorder %s14_s17, 4   ;;  %s653_s16 = smov %s655_s18 }
  0xd5   :  { %13 = sbr.rel (!%p11_p5) target bundleno = 2 (0x2), region = 69 }

// kernel: fno_block_forward.2
= control target key start
LH: loop header
LB: loop body
LE: loop exit
PB: predicated region body
PF: predicated region fallthrough
CT: control target
= control target key end

     0   :  { %vm215_vm0 = vcmask 1043456   ;;  %vm211_vm1 = vcmask 31744   ;;  %vm5845_vm2 = vcmask 25600   ;;  %s7773_s0 = inlined_call_operand.vmem [shape: f32[32,4,2], index: 0, kind: input, shape index: {}]   ;;  %s7774_s1 = inlined_call_operand.vmem [shape: f32[32,4,2], index: 1, kind: input, shape index: {}]   ;;  %s7775_s2 = inlined_call_operand.vmem [shape: f32[32,4,4], index: 2, kind: input, shape index: {}]   ;;  %s7776_s3 = inlined_call_operand.vmem [shape: f32[32,4,4], index: 3, kind: input, shape index: {}]   ;;  %s7777_s4 = inlined_call_operand.vmem [shape: f32[32,2,4], index: 4, kind: output, shape index: {0}]   ;;  %s7778_s5 = inlined_call_operand.vmem [shape: f32[32,2,4], index: 5, kind: output, shape index: {1}]  }
   0x1   :  { %v6176_v0 = vld [vmem:[%s7773_s0 + $0x8] sm:$0xf]  ;;  %v6186_v2 = vld [vmem:[%s7773_s0] sm:$0xf]  ;;  %v6200_v6 = vld [vmem:[%s7773_s0 + $0x18] sm:$0xf] }
   0x2   :  { %v6181_v1 = vld [vmem:[%s7774_s1 + $0x8] sm:$0xf]  ;;  %v6193_v4 = vld [vmem:[%s7774_s1] sm:$0xf]  ;;  %v6205_v7 = vld [vmem:[%s7774_s1 + $0x18] sm:$0xf] }
   0x3   :  { %v149_v3 = vadd.f32 %v6181_v1, %v6176_v0  ;;  %v147_v5 = vadd.f32 %v6193_v4, %v6186_v2  ;;  %v6210_v8 = vld [vmem:[%s7773_s0 + $0xc] sm:$0xf]  ;;  %v153_v10 = vadd.f32 %v6205_v7, %v6200_v6  ;;  %v6222_v11 = vld [vmem:[%s7773_s0 + $0x4] sm:$0xf]  ;;  %v6234_v14 = vld [vmem:[%s7773_s0 + $0x1c] sm:$0xf] }
   0x4   :  { %v6215_v9 = vld [vmem:[%s7774_s1 + $0xc] sm:$0xf]  ;;  %v6227_v12 = vld [vmem:[%s7774_s1 + $0x4] sm:$0xf]  ;;  %v6239_v15 = vld [vmem:[%s7774_s1 + $0x1c] sm:$0xf] }
   0x5   :  { %297 = vxpose.xlu0.b32.start.end [1/1] (short) (narrow) %v149_v3, 8  ;;  %179 = vxpose.xlu1.b32.start.end [1/1] (short) (narrow) %v147_v5, 8  ;;  %v150_v13 = vadd.f32 %v6215_v9, %v6210_v8  ;;  %v148_v16 = vadd.f32 %v6227_v12, %v6222_v11  ;;  %v154_v17 = vadd.f32 %v6239_v15, %v6234_v14  ;;  %v6248_v18 = vld [vmem:[%s7773_s0 + $0x10] sm:$0xf]  ;;  %v6258_v20 = vld [vmem:[%s7773_s0 + $0x14] sm:$0xf] }
   0x6   :  { %529 = vxpose.xlu2.b32.start.end [1/1] (short) (narrow) %v153_v10, 8  ;;  %v6253_v19 = vld [vmem:[%s7774_s1 + $0x10] sm:$0xf]  ;;  %v6263_v21 = vld [vmem:[%s7774_s1 + $0x14] sm:$0xf] }
   0x7   :  { %v151_v22 = vadd.f32 %v6253_v19, %v6248_v18  ;;  %v6270_v23 = vld [vmem:[%s7773_s0 + $0x28] sm:$0xf]  ;;  %v152_v25 = vadd.f32 %v6263_v21, %v6258_v20  ;;  %v6284_v27 = vld [vmem:[%s7773_s0 + $0x2c] sm:$0xf]  ;;  %v6294_v29 = vld [vmem:[%s7773_s0 + $0x20] sm:$0xf] }
   0x8   :  { %v6275_v24 = vld [vmem:[%s7774_s1 + $0x28] sm:$0xf]  ;;  %v6289_v28 = vld [vmem:[%s7774_s1 + $0x2c] sm:$0xf]  ;;  %v6299_v30 = vld [vmem:[%s7774_s1 + $0x20] sm:$0xf] }
   0x9   :  { %v157_v26 = vadd.f32 %v6275_v24, %v6270_v23  ;;  %v158_v31 = vadd.f32 %v6289_v28, %v6284_v27  ;;  %v6306_v32 = vld [vmem:[%s7773_s0 + $0x24] sm:$0xf]  ;;  %v155_v34 = vadd.f32 %v6299_v30, %v6294_v29  ;;  %v6320_v36 = vld [vmem:[%s7773_s0 + $0x38] sm:$0xf]  ;;  %v6330_v38 = vld [vmem:[%s7773_s0 + $0x3c] sm:$0xf] }
   0xa   :  { %v6311_v33 = vld [vmem:[%s7774_s1 + $0x24] sm:$0xf]  ;;  %v6325_v37 = vld [vmem:[%s7774_s1 + $0x38] sm:$0xf]  ;;  %v6335_v39 = vld [vmem:[%s7774_s1 + $0x3c] sm:$0xf] }
   0xb   :  { %v156_v35 = vadd.f32 %v6311_v33, %v6306_v32  ;;  %v161_v40 = vadd.f32 %v6325_v37, %v6320_v36  ;;  %v6342_v41 = vld [vmem:[%s7773_s0 + $0x30] sm:$0xf]  ;;  %v162_v43 = vadd.f32 %v6335_v39, %v6330_v38  ;;  %v6356_v45 = vld [vmem:[%s7773_s0 + $0x34] sm:$0xf]  ;;  %v6366_v47 = vld [vmem:[%s7773_s0 + $0x48] sm:$0xf] }
   0xc   :  { %v6347_v42 = vld [vmem:[%s7774_s1 + $0x30] sm:$0xf]  ;;  %v6361_v46 = vld [vmem:[%s7774_s1 + $0x34] sm:$0xf]  ;;  %v6371_v48 = vld [vmem:[%s7774_s1 + $0x48] sm:$0xf] }
   0xd   :  { %355 = vxpose.xlu0.b32.start.end [1/1] (short) (narrow) %v150_v13, 8  ;;  %239 = vxpose.xlu1.b32.start.end [1/1] (short) (narrow) %v148_v16, 8  ;;  %v159_v44 = vadd.f32 %v6347_v42, %v6342_v41  ;;  %v160_v49 = vadd.f32 %v6361_v46, %v6356_v45  ;;  %v6378_v50 = vld [vmem:[%s7773_s0 + $0x4c] sm:$0xf]  ;;  %v165_v52 = vadd.f32 %v6371_v48, %v6366_v47  ;;  %v6392_v54 = vld [vmem:[%s7773_s0 + $0x40] sm:$0xf] }
   0xe   :  { %587 = vxpose.xlu2.b32.start.end [1/1] (short) (narrow) %v154_v17, 8  ;;  %v6383_v51 = vld [vmem:[%s7774_s1 + $0x4c] sm:$0xf]  ;;  %v6397_v55 = vld [vmem:[%s7774_s1 + $0x40] sm:$0xf] }
   0xf   :  { %v166_v53 = vadd.f32 %v6383_v51, %v6378_v50  ;;  %v6402_v56 = vld [vmem:[%s7773_s0 + $0x44] sm:$0xf]  ;;  %v163_v58 = vadd.f32 %v6397_v55, %v6392_v54  ;;  %v6414_v59 = vld [vmem:[%s7773_s0 + $0x58] sm:$0xf]  ;;  %v6428_v63 = vld [vmem:[%s7773_s0 + $0x5c] sm:$0xf] }
  0x10   :  { %v6407_v57 = vld [vmem:[%s7774_s1 + $0x44] sm:$0xf]  ;;  %v6419_v60 = vld [vmem:[%s7774_s1 + $0x58] sm:$0xf]  ;;  %v6433_v3 = vld [vmem:[%s7774_s1 + $0x5c] sm:$0xf] }
  0x11   :  { %v164_v61 = vadd.f32 %v6407_v57, %v6402_v56  ;;  %v169_v62 = vadd.f32 %v6419_v60, %v6414_v59  ;;  %v6438_v5 = vld [vmem:[%s7773_s0 + $0x50] sm:$0xf]  ;;  %v170_v13 = vadd.f32 %v6433_v3, %v6428_v63  ;;  %v6450_v16 = vld [vmem:[%s7773_s0 + $0x54] sm:$0xf] }
  0x12   :  { %v6443_v10 = vld [vmem:[%s7774_s1 + $0x50] sm:$0xf]  ;;  %v6455_v17 = vld [vmem:[%s7774_s1 + $0x54] sm:$0xf] }
  0x15   :  { %413 = vxpose.xlu0.b32.start.end [1/1] (short) (narrow) %v151_v22, 8  ;;  %471 = vxpose.xlu1.b32.start.end [1/1] (short) (narrow) %v152_v25, 8  ;;  %v167_v22 = vadd.f32 %v6443_v10, %v6438_v5  ;;  %v168_v25 = vadd.f32 %v6455_v17, %v6450_v16 }
  0x16   :  { %761 = vxpose.xlu2.b32.start.end [1/1] (short) (narrow) %v157_v26, 8  ;;  %v6464_v26 = vld [vmem:[%s7773_s0 + $0x68] sm:$0xf] }
  0x1d   :  { %819 = vxpose.xlu0.b32.start.end [1/1] (short) (narrow) %v158_v31, 8  ;;  %645 = vxpose.xlu1.b32.start.end [1/1] (short) (narrow) %v155_v34, 8  ;;  %v6469_v31 = vld [vmem:[%s7774_s1 + $0x68] sm:$0xf]  ;;  %v6474_v34 = vld [vmem:[%s7773_s0 + $0x6c] sm:$0xf] }
  0x1e   :  { %703 = vxpose.xlu2.b32.start.end [1/1] (short) (narrow) %v156_v35, 8  ;;  %v6479_v35 = vld [vmem:[%s7774_s1 + $0x6c] sm:$0xf] }
  0x25   :  { %993 = vxpose.xlu0.b32.start.end [1/1] (short) (narrow) %v161_v40, 8  ;;  %1051 = vxpose.xlu1.b32.start.end [1/1] (short) (narrow) %v162_v43, 8  ;;  %v173_v40 = vadd.f32 %v6469_v31, %v6464_v26  ;;  %v6486_v43 = vld [vmem:[%s7773_s0 + $0x60] sm:$0xf] }
  0x26   :  { %877 = vxpose.xlu2.b32.start.end [1/1] (short) (narrow) %v159_v44, 8  ;;  %7827 = vst [vmem:[#allocation2_spill] sm:$0xff] %v6486_v43  ;;  %v6491_v44 = vld [vmem:[%s7774_s1 + $0x60] sm:$0xf] }
  0x2d   :  { %935 = vxpose.xlu0.b32.start.end [1/1] (short) (narrow) %v160_v49, 8  ;;  %1225 = vxpose.xlu1.b32.start.end [1/1] (short) (narrow) %v165_v52, 8  ;;  %v174_v49 = vadd.f32 %v6479_v35, %v6474_v34  ;;  %v171_v52 = vadd.f32 %v6491_v44, %v6486_v43  ;;  %v6546_v43 = vld [vmem:[%s7773_s0 + $0x74] sm:$0xf] }
  0x2e   :  { %1283 = vxpose.xlu2.b32.start.end [1/1] (short) (narrow) %v166_v53, 8  ;;  %v6500_v53 = vld [vmem:[%s7773_s0 + $0x64] sm:$0xf] }
  0x2f   :  { %7828 = vst [vmem:[#allocation3_spill] sm:$0xff] %v6500_v53 }
  0x35   :  { %1109 = vxpose.xlu0.b32.start.end [1/1] (short) (narrow) %v163_v58, 8  ;;  %1167 = vxpose.xlu1.b32.start.end [1/1] (short) (narrow) %v164_v61, 8  ;;  %v6505_v58 = vld [vmem:[%s7774_s1 + $0x64] sm:$0xf]  ;;  %v6510_v61 = vld [vmem:[%s7773_s0 + $0x78] sm:$0xf] }
  0x36   :  { %1457 = vxpose.xlu2.b32.start.end [1/1] (short) (narrow) %v169_v62, 8  ;;  %v6515_v62 = vld [vmem:[%s7774_s1 + $0x78] sm:$0xf] }
  0x3d   :  { %1515 = vxpose.xlu0.b32.start.end [1/1] (short) (narrow) %v170_v13, 8  ;;  %1341 = vxpose.xlu1.b32.start.end [1/1] (short) (narrow) %v167_v22, 8  ;;  %v172_v13 = vadd.f32 %v6505_v58, %v6500_v53  ;;  %v6522_v22 = vld [vmem:[%s7773_s0 + $0x7c] sm:$0xf]  ;;  %v6541_v53 = vld [vmem:[%s7774_s1 + $0x70] sm:$0xf] }
  0x3e   :  { %1399 = vxpose.xlu2.b32.start.end [1/1] (short) (narrow) %v168_v25, 8  ;;  %7829 = vst [vmem:[#allocation4_spill] sm:$0xff] %v6522_v22  ;;  %v6527_v25 = vld [vmem:[%s7774_s1 + $0x7c] sm:$0xf] }
  0x45   :  { %1689 = vxpose.xlu0.b32.start.end [1/1] (short) (narrow) %v173_v40, 8  ;;  %1747 = vxpose.xlu1.b32.start.end [1/1] (short) (narrow) %v174_v49, 8  ;;  %v177_v40 = vadd.f32 %v6515_v62, %v6510_v61  ;;  %v178_v49 = vadd.f32 %v6527_v25, %v6522_v22 }
  0x46   :  { %1573 = vxpose.xlu2.b32.start.end [1/1] (short) (narrow) %v171_v52, 8  ;;  %v6536_v52 = vld [vmem:[%s7773_s0 + $0x70] sm:$0xf] }
  0x4d   :  { %1631 = vxpose.xlu0.b32.start.end [1/1] (short) (narrow) %v172_v13, 8  ;;  %1921 = vxpose.xlu1.b32.start.end [1/1] (short) (narrow) %v177_v40, 8  ;;  %v6551_v13 = vld [vmem:[%s7774_s1 + $0x74] sm:$0xf]  ;;  %v175_v40 = vadd.f32 %v6541_v53, %v6536_v52 }
  0x4e   :  { %1979 = vxpose.xlu2.b32.start.end [1/1] (short) (narrow) %v178_v49, 8  ;;  %v176_v22 = vadd.f32 %v6551_v13, %v6546_v43  ;;  %v6717_v49 = vld [vmem:[%s7776_s3 + $0x2c] sm:$0xf] }
  0x55   :  { %1805 = vxpose.xlu0.b32.start.end [1/1] (short) (narrow) %v175_v40, 8  ;;  %1863 = vxpose.xlu1.b32.start.end [1/1] (short) (narrow) %v176_v22, 8  ;;  %v6712_v22 = vld [vmem:[%s7775_s2 + $0x2c] sm:$0xf] }
  0x56   :  { %2185 = vxpose.xlu2.b32.start.end [1/1] (short) (narrow) %v6181_v1, 8  ;;  %v6578_v1 = vld [vmem:[%s7775_s2 + $0x8] sm:$0xf] }
  0x57   :  { %5954 = vmatpush.msk.msra.mxu2 %vm215_vm0, %v6578_v1 }
  0x5d   :  { %2243 = vxpose.xlu0.b32.start.end [1/1] (short) (narrow) %v6215_v9, 8  ;;  %2069 = vxpose.xlu1.b32.start.end [1/1] (short) (narrow) %v6193_v4, 8  ;;  %v6583_v4 = vld [vmem:[%s7776_s3 + $0x8] sm:$0xf]  ;;  %v6595_v9 = vld [vmem:[%s7775_s2] sm:$0xf] }
  0x5e   :  { %2127 = vxpose.xlu2.b32.start.end [1/1] (short) (narrow) %v6227_v12, 8  ;;  %v6600_v12 = vld [vmem:[%s7776_s3] sm:$0xf]  ;;  %5950 = vmatpush.msk.msra.mxu0 %vm215_vm0, %v6595_v9 }
  0x65   :  { %2417 = vxpose.xlu0.b32.start.end [1/1] (short) (narrow) %v6205_v7, 8  ;;  %2475 = vxpose.xlu1.b32.start.end [1/1] (short) (narrow) %v6239_v15, 8  ;;  %v6783_v15 = vld [vmem:[%s7775_s2 + $0x3c] sm:$0xf] }
  0x66   :  { %2301 = vxpose.xlu2.b32.start.end [1/1] (short) (narrow) %v6253_v19, 8  ;;  %v6609_v19 = vld [vmem:[%s7775_s2 + $0xc] sm:$0xf] }
  0x67   :  { %5956 = vmatpush.msk.msra.mxu3 %vm215_vm0, %v6609_v19 }
  0x6d   :  { %2359 = vxpose.xlu0.b32.start.end [1/1] (short) (narrow) %v6263_v21, 8  ;;  %2649 = vxpose.xlu1.b32.start.end [1/1] (short) (narrow) %v6275_v24, 8  ;;  %v6614_v21 = vld [vmem:[%s7776_s3 + $0xc] sm:$0xf]  ;;  %v6619_v24 = vld [vmem:[%s7775_s2 + $0x18] sm:$0xf] }
  0x6e   :  { %2707 = vxpose.xlu2.b32.start.end [1/1] (short) (narrow) %v6289_v28, 8  ;;  %5962 = vmatpush.msk.msrb.mxu2 %vm215_vm0, %v6619_v24 }
  0x75   :  { %2533 = vxpose.xlu0.b32.start.end [1/1] (short) (narrow) %v6299_v30, 8  ;;  %2591 = vxpose.xlu1.b32.start.end [1/1] (short) (narrow) %v6311_v33, 8  ;;  %v6629_v30 = vld [vmem:[%s7776_s3 + $0x18] sm:$0xf] }
  0x76   :  { %2881 = vxpose.xlu2.b32.start.end [1/1] (short) (narrow) %v6325_v37, 8  ;;  %v6640_v37 = vld [vmem:[%s7775_s2 + $0x4] sm:$0xf] }
  0x77   :  { %5952 = vmatpush.msk.msra.mxu1 %vm215_vm0, %v6640_v37 }
  0x7d   :  { %2939 = vxpose.xlu0.b32.start.end [1/1] (short) (narrow) %v6335_v39, 8  ;;  %2765 = vxpose.xlu1.b32.start.end [1/1] (short) (narrow) %v6347_v42, 8  ;;  %v6645_v39 = vld [vmem:[%s7776_s3 + $0x4] sm:$0xf] }
  0x7e   :  { %2823 = vxpose.xlu2.b32.start.end [1/1] (short) (narrow) %v6361_v46, 8  ;;  %v6654_v46 = vld [vmem:[%s7775_s2 + $0x10] sm:$0xf] }
  0x7f   :  { %5958 = vmatpush.msk.msrb.mxu0 %vm215_vm0, %v6654_v46 }
  0x85   :  { %3113 = vxpose.xlu0.b32.start.end [1/1] (short) (narrow) %v6371_v48, 8  ;;  %3171 = vxpose.xlu1.b32.start.end [1/1] (short) (narrow) %v6383_v51, 8  ;;  %v6659_v48 = vld [vmem:[%s7776_s3 + $0x10] sm:$0xf]  ;;  %v6664_v51 = vld [vmem:[%s7775_s2 + $0x1c] sm:$0xf] }
  0x86   :  { %2997 = vxpose.xlu2.b32.start.end [1/1] (short) (narrow) %v6397_v55, 8  ;;  %5964 = vmatpush.msk.msrb.mxu3 %vm215_vm0, %v6664_v51  ;;  %v6751_v55 = vld [vmem:[%s7775_s2 + $0x38] sm:$0xf] }
  0x8d   :  { %3055 = vxpose.xlu0.b32.start.end [1/1] (short) (narrow) %v6407_v57, 8  ;;  %3345 = vxpose.xlu1.b32.start.end [1/1] (short) (narrow) %v6419_v60, 8  ;;  %v6674_v57 = vld [vmem:[%s7776_s3 + $0x1c] sm:$0xf]  ;;  %v6756_v60 = vld [vmem:[%s7776_s3 + $0x38] sm:$0xf] }
  0x8e   :  { %3403 = vxpose.xlu2.b32.start.end [1/1] (short) (narrow) %v6433_v3, 8  ;;  %v6685_v3 = vld [vmem:[%s7775_s2 + $0x14] sm:$0xf]  ;;  %7830 = vst [vmem:[#allocation5_spill] sm:$0xff] %v6756_v60 }
  0x8f   :  { %5960 = vmatpush.msk.msrb.mxu1 %vm215_vm0, %v6685_v3 }
  0x95   :  { %3229 = vxpose.xlu0.b32.start.end [1/1] (short) (narrow) %v6443_v10, 8  ;;  %3287 = vxpose.xlu1.b32.start.end [1/1] (short) (narrow) %v6455_v17, 8  ;;  %v6690_v10 = vld [vmem:[%s7776_s3 + $0x14] sm:$0xf] }
  0x96   :  { %3577 = vxpose.xlu2.b32.start.end [1/1] (short) (narrow) %v6469_v31, 8  ;;  %v6699_v31 = vld [vmem:[%s7775_s2 + $0x28] sm:$0xf] }
  0x9d   :  { %3635 = vxpose.xlu0.b32.start.end [1/1] (short) (narrow) %v6479_v35, 8  ;;  %3461 = vxpose.xlu1.b32.start.end [1/1] (short) (narrow) %v6491_v44, 8  ;;  %v6704_v35 = vld [vmem:[%s7776_s3 + $0x28] sm:$0xf]  ;;  %v6731_v44 = vld [vmem:[%s7776_s3 + $0x20] sm:$0xf] }
  0x9e   :  { %3519 = vxpose.xlu2.b32.start.end [1/1] (short) (narrow) %v6505_v58, 8  ;;  %v6726_v58 = vld [vmem:[%s7775_s2 + $0x20] sm:$0xf] }
  0x9f   :  { %v545_v40 = vpop.trf.xlu2 }
  0xa5   :  { %3809 = vxpose.xlu0.b32.start.end [1/1] (short) (narrow) %v6515_v62, 8  ;;  %3867 = vxpose.xlu1.b32.start.end [1/1] (short) (narrow) %v6527_v25, 8  ;;  %v6738_v62 = vld [vmem:[%s7775_s2 + $0x24] sm:$0xf] }
  0xa6   :  { %v6743_v25 = vld [vmem:[%s7776_s3 + $0x24] sm:$0xf]  ;;  %3693 = vxpose.xlu2.b32.start.end [1/1] (short) (narrow) %v6541_v53, 8  ;;  %v6771_v53 = vld [vmem:[%s7775_s2 + $0x30] sm:$0xf] }
  0xa7   :  { %v603_v42 = vpop.trf.xlu2 }
  0xa9   :  { %v313_v33 = vpop.trf.xlu0  ;;  %v195_v28 = vpop.trf.xlu1 }
  0xaa   :  { %5955 = vmatmul.msk.f32.vlgmr.msra.gmra.mxu2 %vm211_vm1, %v313_v33  ;;  %5951 = vmatmul.msk.f32.vlgmr.msra.gmra.mxu0 %vm211_vm1, %v195_v28  ;;  %v6776_v33 = vld [vmem:[%s7776_s3 + $0x30] sm:$0xf]  ;;  %v6796_v28 = vld [vmem:[%s7775_s2 + $0x34] sm:$0xf] }
  0xab   :  { %5970 = vmatpush.msk.msra.mxu2 %vm215_vm0, %v6699_v31  ;;  %5966 = vmatpush.msk.msra.mxu0 %vm215_vm0, %v6726_v58  ;;  %7831 = vst [vmem:[#allocation6_spill] sm:$0xff] %v6776_v33  ;;  %v6801_v33 = vld [vmem:[%s7776_s3 + $0x34] sm:$0xf] }
  0xac   :  { %7833 = vst [vmem:[#allocation8_spill] sm:$0xff] %v6801_v33 }
  0xad   :  { %3751 = vxpose.xlu0.b32.start.end [1/1] (short) (narrow) %v6551_v13, 8  ;;  %4073 = vxpose.xlu1.b32.start.end [1/1] (short) (narrow) %v6176_v0, 8  ;;  %v6788_v0 = vld [vmem:[%s7776_s3 + $0x3c] sm:$0xf] }
  0xae   :  { %7832 = vst [vmem:[#allocation7_spill] sm:$0xff] %v6788_v0  ;;  %4131 = vxpose.xlu2.b32.start.end [1/1] (short) (narrow) %v6210_v8, 8  ;;  %v6831_v8 = vld [vmem:[%s7775_s2 + $0x4c] sm:$0xf] }
  0xaf   :  { %v777_v7 = vpop.trf.xlu2  ;;  %7835 = vst [vmem:[#allocation10_spill] sm:$0xff] %v6831_v8 }
  0xb1   :  { %v371_v17 = vpop.trf.xlu0  ;;  %v255_v60 = vpop.trf.xlu1 }
  0xb2   :  { %5957 = vmatmul.msk.f32.vlgmr.msra.gmra.mxu3 %vm211_vm1, %v371_v17  ;;  %5963 = vmatmul.msk.f32.vlgmr.msrb.gmra.mxu2 %vm211_vm1, %v545_v40  ;;  %v6819_v17 = vld [vmem:[%s7775_s2 + $0x48] sm:$0xf]  ;;  %v6844_v40 = vld [vmem:[%s7775_s2 + $0x40] sm:$0xf] }
  0xb3   :  { %5953 = vmatmul.msk.f32.vlgmr.msra.gmra.mxu1 %vm211_vm1, %v255_v60  ;;  %5972 = vmatpush.msk.msra.mxu3 %vm215_vm0, %v6712_v22  ;;  %v6824_v60 = vld [vmem:[%s7776_s3 + $0x48] sm:$0xf] }
  0xb4   :  { %5968 = vmatpush.msk.msra.mxu1 %vm215_vm0, %v6738_v62  ;;  %5978 = vmatpush.msk.msrb.mxu2 %vm215_vm0, %v6751_v55  ;;  %7834 = vst [vmem:[#allocation9_spill] sm:$0xff] %v6824_v60  ;;  %v6849_v60 = vld [vmem:[%s7776_s3 + $0x40] sm:$0xf] }
  0xb5   :  { %3957 = vxpose.xlu0.b32.start.end [1/1] (short) (narrow) %v6186_v2, 8  ;;  %4015 = vxpose.xlu1.b32.start.end [1/1] (short) (narrow) %v6222_v11, 8  ;;  %v6836_v2 = vld [vmem:[%s7776_s3 + $0x4c] sm:$0xf]  ;;  %7837 = vst [vmem:[#allocation12_spill] sm:$0xff] %v6849_v60 }
  0xb6   :  { %7836 = vst [vmem:[#allocation11_spill] sm:$0xff] %v6836_v2  ;;  %4305 = vxpose.xlu2.b32.start.end [1/1] (short) (narrow) %v6200_v6, 8 }
  0xb7   :  { %v719_v33 = vpop.trf.xlu2 }
  0xb9   :  { %v429_v13 = vpop.trf.xlu0  ;;  %v487_v0 = vpop.trf.xlu1 }
  0xba   :  { %5959 = vmatmul.msk.f32.vlgmr.msrb.gmra.mxu0 %vm211_vm1, %v429_v13  ;;  %5965 = vmatmul.msk.f32.vlgmr.msrb.gmra.mxu3 %vm211_vm1, %v603_v42  ;;  %v6875_v42 = vld [vmem:[%s7776_s3 + $0x44] sm:$0xf] }
  0xbb   :  { %5961 = vmatmul.msk.f32.vlgmr.msrb.gmra.mxu1 %vm211_vm1, %v487_v0  ;;  %5971 = vmatmul.msk.f32.vlgmr.msra.gmra.mxu2 %vm211_vm1, %v777_v7  ;;  %v6870_v7 = vld [vmem:[%s7775_s2 + $0x44] sm:$0xf]  ;;  %7839 = vst [vmem:[#allocation14_spill] sm:$0xff] %v6875_v42  ;;  %v6887_v0 = vld [vmem:[%s7776_s3 + $0x58] sm:$0xf] }
  0xbc   :  { %5974 = vmatpush.msk.msrb.mxu0 %vm215_vm0, %v6771_v53  ;;  %5980 = vmatpush.msk.msrb.mxu3 %vm215_vm0, %v6783_v15  ;;  %7838 = vst [vmem:[#allocation13_spill] sm:$0xff] %v6870_v7  ;;  %v6900_v42 = vld [vmem:[%s7776_s3 + $0x5c] sm:$0xf] }
  0xbd   :  { %4363 = vxpose.xlu0.b32.start.end [1/1] (short) (narrow) %v6234_v14, 8  ;;  %5976 = vmatpush.msk.msrb.mxu1 %vm215_vm0, %v6796_v28  ;;  %7841 = vst [vmem:[#allocation16_spill] sm:$0xff] %v6887_v0  ;;  %v6895_v14 = vld [vmem:[%s7775_s2 + $0x5c] sm:$0xf] }
  0xbe   :  { %4189 = vxpose.xlu1.b32.start.end [1/1] (short) (narrow) %v6248_v18, 8  ;;  %5986 = vmatpush.msk.msra.mxu2 %vm215_vm0, %v6819_v17  ;;  %v6882_v18 = vld [vmem:[%s7775_s2 + $0x58] sm:$0xf]  ;;  %7842 = vst [vmem:[#allocation17_spill] sm:$0xff] %v6900_v42 }
  0xbf   :  { %7840 = vst [vmem:[#allocation15_spill] sm:$0xff] %v6882_v18  ;;  %4247 = vxpose.xlu2.b32.start.end [1/1] (short) (narrow) %v6258_v20, 8  ;;  %v893_v6 = vpop.trf.xlu2 }
  0xc1   :  { %v835_v11 = vpop.trf.xlu0  ;;  %v661_v60 = vpop.trf.xlu1 }
  0xc2   :  { %5973 = vmatmul.msk.f32.vlgmr.msra.gmra.mxu3 %vm211_vm1, %v835_v11  ;;  %5967 = vmatmul.msk.f32.vlgmr.msra.gmra.mxu0 %vm211_vm1, %v661_v60  ;;  %v6918_v11 = vld [vmem:[%s7775_s2 + $0x50] sm:$0xf]  ;;  %v6943_v60 = vld [vmem:[%s7775_s2 + $0x68] sm:$0xf] }
  0xc3   :  { %5969 = vmatmul.msk.f32.vlgmr.msra.gmra.mxu1 %vm211_vm1, %v719_v33  ;;  %5988 = vmatpush.msk.msra.mxu3 %vm215_vm0, %v6831_v8  ;;  %7843 = vst [vmem:[#allocation18_spill] sm:$0xff] %v6918_v11  ;;  %v6923_v33 = vld [vmem:[%s7776_s3 + $0x50] sm:$0xf] }
  0xc4   :  { %5982 = vmatpush.msk.msra.mxu0 %vm215_vm0, %v6844_v40  ;;  %5984 = vmatpush.msk.msra.mxu1 %vm215_vm0, %v6870_v7  ;;  %7844 = vst [vmem:[#allocation19_spill] sm:$0xff] %v6923_v33  ;;  %v6948_v33 = vld [vmem:[%s7776_s3 + $0x68] sm:$0xf] }
  0xc5   :  { %4537 = vxpose.xlu0.b32.start.end [1/1] (short) (narrow) %v6270_v23, 8  ;;  %v6930_v23 = vld [vmem:[%s7775_s2 + $0x54] sm:$0xf]  ;;  %7847 = vst [vmem:[#allocation22_spill] sm:$0xff] %v6948_v33 }
  0xc6   :  { %4595 = vxpose.xlu1.b32.start.end [1/1] (short) (narrow) %v6284_v27, 8  ;;  %7845 = vst [vmem:[#allocation20_spill] sm:$0xff] %v6930_v23  ;;  %v6935_v27 = vld [vmem:[%s7776_s3 + $0x54] sm:$0xf] }
  0xc7   :  { %7846 = vst [vmem:[#allocation21_spill] sm:$0xff] %v6935_v27  ;;  %4421 = vxpose.xlu2.b32.start.end [1/1] (short) (narrow) %v6294_v29, 8  ;;  %v1299_v42 = vpop.trf.xlu2  ;;  %v7004_v29 = vld [vmem:[%s7775_s2 + $0x78] sm:$0xf] }
  0xc9   :  { %v1009_v13 = vpop.trf.xlu0  ;;  %v1067_v0 = vpop.trf.xlu1 }
  0xca   :  { %5979 = vmatmul.msk.f32.vlgmr.msrb.gmra.mxu2 %vm211_vm1, %v1009_v13  ;;  %5975 = vmatmul.msk.f32.vlgmr.msrb.gmra.mxu0 %vm211_vm1, %v893_v6  ;;  %v6966_v13 = vld [vmem:[%s7775_s2 + $0x60] sm:$0xf] }
  0xcb   :  { %5981 = vmatmul.msk.f32.vlgmr.msrb.gmra.mxu3 %vm211_vm1, %v1067_v0  ;;  %5994 = vmatpush.msk.msrb.mxu2 %vm215_vm0, %v6882_v18  ;;  %7848 = vst [vmem:[#allocation23_spill] sm:$0xff] %v6966_v13  ;;  %v6971_v6 = vld [vmem:[%s7776_s3 + $0x60] sm:$0xf]  ;;  %v6991_v0 = vld [vmem:[%s7775_s2 + $0x64] sm:$0xf] }
  0xcc   :  { %5996 = vmatpush.msk.msrb.mxu3 %vm215_vm0, %v6895_v14  ;;  %5990 = vmatpush.msk.msrb.mxu0 %vm215_vm0, %v6918_v11  ;;  %7849 = vst [vmem:[#allocation24_spill] sm:$0xff] %v6971_v6  ;;  %v6996_v6 = vld [vmem:[%s7776_s3 + $0x64] sm:$0xf] }
  0xcd   :  { %4479 = vxpose.xlu0.b32.start.end [1/1] (short) (narrow) %v6306_v32, 8  ;;  %v6978_v32 = vld [vmem:[%s7775_s2 + $0x6c] sm:$0xf]  ;;  %7852 = vst [vmem:[#allocation27_spill] sm:$0xff] %v6996_v6 }
  0xce   :  { %4769 = vxpose.xlu1.b32.start.end [1/1] (short) (narrow) %v6320_v36, 8  ;;  %7850 = vst [vmem:[#allocation25_spill] sm:$0xff] %v6978_v32  ;;  %v6983_v36 = vld [vmem:[%s7776_s3 + $0x6c] sm:$0xf] }
  0xcf   :  { %7851 = vst [vmem:[#allocation26_spill] sm:$0xff] %v6983_v36  ;;  %4827 = vxpose.xlu2.b32.start.end [1/1] (short) (narrow) %v6330_v38, 8  ;;  %v1473_v33 = vpop.trf.xlu2  ;;  %v7009_v36 = vld [vmem:[%s7776_s3 + $0x78] sm:$0xf] }
  0xd0   :  { %7853 = vst [vmem:[#allocation28_spill] sm:$0xff] %v7009_v36  ;;  %v7044_v36 = vld [vmem:[%s7776_s3 + $0x70] sm:$0xf] }
  0xd1   :  { %v951_v20 = vpop.trf.xlu0  ;;  %v1241_v27 = vpop.trf.xlu1 }
  0xd2   :  { %5977 = vmatmul.msk.f32.vlgmr.msrb.gmra.mxu1 %vm211_vm1, %v951_v20  ;;  %5987 = vmatmul.msk.f32.vlgmr.msra.gmra.mxu2 %vm211_vm1, %v1241_v27  ;;  %v7031_v27 = vld [vmem:[%s7776_s3 + $0x7c] sm:$0xf] }
  0xd3   :  { %5989 = vmatmul.msk.f32.vlgmr.msra.gmra.mxu3 %vm211_vm1, %v1299_v42  ;;  %5992 = vmatpush.msk.msrb.mxu1 %vm215_vm0, %v6930_v23  ;;  %v7026_v42 = vld [vmem:[%s7775_s2 + $0x7c] sm:$0xf]  ;;  %7855 = vst [vmem:[#allocation30_spill] sm:$0xff] %v7031_v27  ;;  %v7057_v27 = vld [vmem:[%s7776_s3 + $0x74] sm:$0xf] }
  0xd4   :  { %6002 = vmatpush.msk.msra.mxu2 %vm215_vm0, %v6943_v60  ;;  %6004 = vmatpush.msk.msra.mxu3 %vm215_vm0, %v6978_v32  ;;  %7854 = vst [vmem:[#allocation29_spill] sm:$0xff] %v7026_v42 }
  0xd5   :  { %4653 = vxpose.xlu0.b32.start.end [1/1] (short) (narrow) %v6342_v41, 8  ;;  %7857 = vst [vmem:[#allocation32_spill] sm:$0xff] %v7057_v27 }
  0xd6   :  { %4711 = vxpose.xlu1.b32.start.end [1/1] (short) (narrow) %v6356_v45, 8  ;;  %v7039_v45 = vld [vmem:[%s7775_s2 + $0x70] sm:$0xf] }
  0xd7   :  { %5001 = vxpose.xlu2.b32.start.end [1/1] (short) (narrow) %v6366_v47, 8  ;;  %v1415_v38 = vpop.trf.xlu2  ;;  %v7052_v47 = vld [vmem:[%s7775_s2 + $0x74] sm:$0xf] }
  0xd8   :  { %7856 = vst [vmem:[#allocation31_spill] sm:$0xff] %v7052_v47 }
  0xd9   :  { %v1125_v41 = vpop.trf.xlu0  ;;  %v1183_v6 = vpop.trf.xlu1 }
  0xda   :  { %5983 = vmatmul.msk.f32.vlgmr.msra.gmra.mxu0 %vm211_vm1, %v1125_v41  ;;  %5985 = vmatmul.msk.f32.vlgmr.msra.gmra.mxu1 %vm211_vm1, %v1183_v6  ;;  %v7868_v41 = vld [vmem:[#allocation16_spill] sm:$0xff] }
  0xdb   :  { %5995 = vmatmul.msk.f32.vlgmr.msrb.gmra.mxu2 %vm211_vm1, %v1473_v33  ;;  %5998 = vmatpush.msk.msra.mxu0 %vm215_vm0, %v6966_v13 }
  0xdc   :  { %6000 = vmatpush.msk.msra.mxu1 %vm215_vm0, %v6991_v0  ;;  %6010 = vmatpush.msk.msrb.mxu2 %vm215_vm0, %v7004_v29 }
  0xdd   :  { %5059 = vxpose.xlu0.b32.start.end [1/1] (short) (narrow) %v6378_v50, 8  ;;  %v2039_v50 = vadd.f32 %v6583_v4, %v6578_v1 }
  0xde   :  { %4885 = vxpose.xlu1.b32.start.end [1/1] (short) (narrow) %v6392_v54, 8  ;;  %v2037_v54 = vadd.f32 %v6600_v12, %v6595_v9 }
  0xdf   :  { %4943 = vxpose.xlu2.b32.start.end [1/1] (short) (narrow) %v6402_v56, 8  ;;  %v1589_v33 = vpop.trf.xlu2  ;;  %v2040_v56 = vadd.f32 %v6614_v21, %v6609_v19 }
  0xe1   :  { %v1531_v6 = vpop.trf.xlu0  ;;  %v1357_v20 = vpop.trf.xlu1 }
  0xe2   :  { %5997 = vmatmul.msk.f32.vlgmr.msrb.gmra.mxu3 %vm211_vm1, %v1531_v6  ;;  %5991 = vmatmul.msk.f32.vlgmr.msrb.gmra.mxu0 %vm211_vm1, %v1357_v20 }
  0xe3   :  { %5993 = vmatmul.msk.f32.vlgmr.msrb.gmra.mxu1 %vm211_vm1, %v1415_v38  ;;  %6012 = vmatpush.msk.msrb.mxu3 %vm215_vm0, %v7026_v42 }
  0xe4   :  { %6006 = vmatpush.msk.msrb.mxu0 %vm215_vm0, %v7039_v45  ;;  %6008 = vmatpush.msk.msrb.mxu1 %vm215_vm0, %v7052_v47 }
  0xe5   :  { %5233 = vxpose.xlu0.b32.start.end [1/1] (short) (narrow) %v6414_v59, 8  ;;  %v2043_v59 = vadd.f32 %v6629_v30, %v6619_v24 }
  0xe6   :  { %5291 = vxpose.xlu1.b32.start.end [1/1] (short) (narrow) %v6428_v63, 8  ;;  %v2038_v63 = vadd.f32 %v6645_v39, %v6640_v37 }
  0xe7   :  { %5117 = vxpose.xlu2.b32.start.end [1/1] (short) (narrow) %v6438_v5, 8  ;;  %v1995_v20 = vpop.trf.xlu2  ;;  %v2044_v5 = vadd.f32 %v6674_v57, %v6664_v51 }
  0xe9   :  { %v1705_v38 = vpop.trf.xlu0  ;;  %v1763_v6 = vpop.trf.xlu1 }
  0xea   :  { %6003 = vmatmul.msk.f32.vlgmr.msra.gmra.mxu2 %vm211_vm1, %v1705_v38  ;;  %5999 = vmatmul.msk.f32.vlgmr.msra.gmra.mxu0 %vm211_vm1, %v1589_v33  ;;  %v2047_v38 = vadd.f32 %v6704_v35, %v6699_v31 }
  0xeb   :  { %6005 = vmatmul.msk.f32.vlgmr.msra.gmra.mxu3 %vm211_vm1, %v1763_v6  ;;  %6018 = vmatpush.msk.msra.mxu2 %vm215_vm0, %v2039_v50 }
  0xec   :  { %6014 = vmatpush.msk.msra.mxu0 %vm215_vm0, %v2037_v54  ;;  %6020 = vmatpush.msk.msra.mxu3 %vm215_vm0, %v2040_v56  ;;  %v2042_v56 = vadd.f32 %v6690_v10, %v6685_v3 }
  0xed   :  { %5175 = vxpose.xlu0.b32.start.end [1/1] (short) (narrow) %v6450_v16, 8  ;;  %v7858_v16 = vld [vmem:[#allocation2_spill] sm:$0xff] }
  0xee   :  { %5465 = vxpose.xlu1.b32.start.end [1/1] (short) (narrow) %v6464_v26, 8  ;;  %v7859_v26 = vld [vmem:[#allocation3_spill] sm:$0xff] }
  0xef   :  { %5523 = vxpose.xlu2.b32.start.end [1/1] (short) (narrow) %v6474_v34, 8  ;;  %v2201_v50 = vpop.trf.xlu2  ;;  %v2041_v34 = vadd.f32 %v6659_v48, %v6654_v46 }
  0xf1   :  { %v1647_v33 = vpop.trf.xlu0  ;;  %v1937_v54 = vpop.trf.xlu1 }
  0xf2   :  { %6001 = vmatmul.msk.f32.vlgmr.msra.gmra.mxu1 %vm211_vm1, %v1647_v33  ;;  %6011 = vmatmul.msk.f32.vlgmr.msrb.gmra.mxu2 %vm211_vm1, %v1937_v54  ;;  %v2046_v33 = vadd.f32 %v6743_v25, %v6738_v62 }
  0xf3   :  { %6013 = vmatmul.msk.f32.vlgmr.msrb.gmra.mxu3 %vm211_vm1, %v1995_v20  ;;  %6016 = vmatpush.msk.msra.mxu1 %vm215_vm0, %v2038_v63  ;;  %v7860_v63 = vld [vmem:[#allocation4_spill] sm:$0xff] }
  0xf4   :  { %6026 = vmatpush.msk.msrb.mxu2 %vm215_vm0, %v2043_v59  ;;  %6028 = vmatpush.msk.msrb.mxu3 %vm215_vm0, %v2044_v5  ;;  %v2045_v5 = vadd.f32 %v6731_v44, %v6726_v58 }
  0xf5   :  { %5349 = vxpose.xlu0.b32.start.end [1/1] (short) (narrow) %v7858_v16, 8 }
  0xf6   :  { %5407 = vxpose.xlu1.b32.start.end [1/1] (short) (narrow) %v7859_v26, 8  ;;  %v7862_v26 = vld [vmem:[#allocation6_spill] sm:$0xff] }
  0xf7   :  { %5697 = vxpose.xlu2.b32.start.end [1/1] (short) (narrow) %v6510_v61, 8  ;;  %v2143_v6 = vpop.trf.xlu2  ;;  %v2048_v61 = vadd.f32 %v6717_v49, %v6712_v22 }
  0xf9   :  { %v1821_v20 = vpop.trf.xlu0  ;;  %v1879_v59 = vpop.trf.xlu1 }
  0xfa   :  { %6007 = vmatmul.msk.f32.vlgmr.msrb.gmra.mxu0 %vm211_vm1, %v1821_v20  ;;  %6009 = vmatmul.msk.f32.vlgmr.msrb.gmra.mxu1 %vm211_vm1, %v1879_v59 }
  0xfb   :  { %6019 = vmatmul.msk.f32.vlgmr.msra.gmra.mxu2 %vm211_vm1, %v2201_v50  ;;  %6022 = vmatpush.msk.msrb.mxu0 %vm215_vm0, %v2041_v34  ;;  %v2049_v34 = vadd.f32 %v7862_v26, %v6771_v53 }
  0xfc   :  { %6024 = vmatpush.msk.msrb.mxu1 %vm215_vm0, %v2042_v56  ;;  %6034 = vmatpush.msk.msra.mxu2 %vm215_vm0, %v2047_v38  ;;  %v7863_v56 = vld [vmem:[#allocation7_spill] sm:$0xff] }
  0xfd   :  { %5755 = vxpose.xlu0.b32.start.end [1/1] (short) (narrow) %v7860_v63, 8  ;;  %v2052_v38 = vadd.f32 %v7863_v56, %v6783_v15 }
  0xfe   :  { %5581 = vxpose.xlu1.b32.start.end [1/1] (short) (narrow) %v6536_v52, 8 }
  0xff   :  { %5639 = vxpose.xlu2.b32.start.end [1/1] (short) (narrow) %v6546_v43, 8  ;;  %v2317_v54 = vpop.trf.xlu2  ;;  %v7861_v43 = vld [vmem:[#allocation5_spill] sm:$0xff] }
 0x100   :  { %v2051_v52 = vadd.f32 %v7861_v43, %v6751_v55 }
 0x101   :  { %v2259_v50 = vpop.trf.xlu0  ;;  %v2085_v16 = vpop.trf.xlu1 }
 0x102   :  { %6021 = vmatmul.msk.f32.vlgmr.msra.gmra.mxu3 %vm211_vm1, %v2259_v50  ;;  %6015 = vmatmul.msk.f32.vlgmr.msra.gmra.mxu0 %vm211_vm1, %v2085_v16  ;;  %v2056_v50 = vadd.f32 %v6836_v2, %v6831_v8  ;;  %v2059_v8 = vadd.f32 %v7868_v41, %v6882_v18  ;;  %v7871_v18 = vld [vmem:[#allocation21_spill] sm:$0xff] }
 0x103   :  { %6017 = vmatmul.msk.f32.vlgmr.msra.gmra.mxu1 %vm211_vm1, %v2143_v6  ;;  %6036 = vmatpush.msk.msra.mxu3 %vm215_vm0, %v2048_v61  ;;  %v7864_v6 = vld [vmem:[#allocation8_spill] sm:$0xff]  ;;  %v2058_v41 = vadd.f32 %v7871_v18, %v6930_v23  ;;  %v7874_v23 = vld [vmem:[#allocation26_spill] sm:$0xff] }
 0x104   :  { %6030 = vmatpush.msk.msra.mxu0 %vm215_vm0, %v2045_v5  ;;  %6032 = vmatpush.msk.msra.mxu1 %vm215_vm0, %v2046_v33  ;;  %v2050_v61 = vadd.f32 %v7864_v6, %v6796_v28  ;;  %v7865_v5 = vld [vmem:[#allocation9_spill] sm:$0xff]  ;;  %v2064_v18 = vadd.f32 %v7874_v23, %v6978_v32 }
 0x105   :  { %v2055_v33 = vadd.f32 %v7865_v5, %v6819_v17 }
 0x107   :  { %v2723_v59 = vpop.trf.xlu2 }
 0x109   :  { %v2433_v20 = vpop.trf.xlu0  ;;  %v2491_v63 = vpop.trf.xlu1 }
 0x10a   :  { %6027 = vmatmul.msk.f32.vlgmr.msrb.gmra.mxu2 %vm211_vm1, %v2433_v20  ;;  %6023 = vmatmul.msk.f32.vlgmr.msrb.gmra.mxu0 %vm211_vm1, %v2317_v54 }
 0x10b   :  { %6029 = vmatmul.msk.f32.vlgmr.msrb.gmra.mxu3 %vm211_vm1, %v2491_v63  ;;  %6042 = vmatpush.msk.msrb.mxu2 %vm215_vm0, %v2051_v52  ;;  %v7866_v52 = vld [vmem:[#allocation12_spill] sm:$0xff] }
 0x10c   :  { %6038 = vmatpush.msk.msrb.mxu0 %vm215_vm0, %v2049_v34  ;;  %6044 = vmatpush.msk.msrb.mxu3 %vm215_vm0, %v2052_v38  ;;  %v2053_v34 = vadd.f32 %v7866_v52, %v6844_v40  ;;  %v7867_v38 = vld [vmem:[#allocation14_spill] sm:$0xff] }
 0x10d   :  { %v2054_v63 = vadd.f32 %v7867_v38, %v6870_v7 }
 0x10f   :  { %v2897_v20 = vpop.trf.xlu2 }
 0x111   :  { %v2375_v16 = vpop.trf.xlu0  ;;  %v2665_v54 = vpop.trf.xlu1 }
 0x112   :  { %6025 = vmatmul.msk.f32.vlgmr.msrb.gmra.mxu1 %vm211_vm1, %v2375_v16  ;;  %6035 = vmatmul.msk.f32.vlgmr.msra.gmra.mxu2 %vm211_vm1, %v2665_v54 }
 0x113   :  { %6037 = vmatmul.msk.f32.vlgmr.msra.gmra.mxu3 %vm211_vm1, %v2723_v59  ;;  %6040 = vmatpush.msk.msrb.mxu1 %vm215_vm0, %v2050_v61  ;;  %v7869_v59 = vld [vmem:[#allocation17_spill] sm:$0xff] }
 0x114   :  { %6050 = vmatpush.msk.msra.mxu2 %vm215_vm0, %v2055_v33  ;;  %6052 = vmatpush.msk.msra.mxu3 %vm215_vm0, %v2056_v50  ;;  %v2060_v61 = vadd.f32 %v7869_v59, %v6895_v14  ;;  %v7870_v33 = vld [vmem:[#allocation19_spill] sm:$0xff] }
 0x115   :  { %v2057_v50 = vadd.f32 %v7870_v33, %v6918_v11 }
 0x117   :  { %v2839_v2 = vpop.trf.xlu2 }
 0x119   :  { %v2549_v16 = vpop.trf.xlu0  ;;  %v2607_v54 = vpop.trf.xlu1 }
 0x11a   :  { %6031 = vmatmul.msk.f32.vlgmr.msra.gmra.mxu0 %vm211_vm1, %v2549_v16  ;;  %6033 = vmatmul.msk.f32.vlgmr.msra.gmra.mxu1 %vm211_vm1, %v2607_v54 }
 0x11b   :  { %6043 = vmatmul.msk.f32.vlgmr.msrb.gmra.mxu2 %vm211_vm1, %v2897_v20  ;;  %6046 = vmatpush.msk.msra.mxu0 %vm215_vm0, %v2053_v34  ;;  %v7873_v34 = vld [vmem:[#allocation24_spill] sm:$0xff] }
 0x11c   :  { %6048 = vmatpush.msk.msra.mxu1 %vm215_vm0, %v2054_v63  ;;  %6058 = vmatpush.msk.msrb.mxu2 %vm215_vm0, %v2059_v8  ;;  %v7872_v8 = vld [vmem:[#allocation22_spill] sm:$0xff]  ;;  %v2061_v63 = vadd.f32 %v7873_v34, %v6966_v13 }
 0x11d   :  { %v2063_v20 = vadd.f32 %v7872_v8, %v6943_v60  ;;  %v7877_v13 = vld [vmem:[#allocation30_spill] sm:$0xff] }
 0x11e   :  { %v2068_v34 = vadd.f32 %v7877_v13, %v7026_v42 }
 0x11f   :  { %v3013_v7 = vpop.trf.xlu2 }
 0x121   :  { %v2955_v16 = vpop.trf.xlu0  ;;  %v2781_v54 = vpop.trf.xlu1 }
 0x122   :  { %6045 = vmatmul.msk.f32.vlgmr.msrb.gmra.mxu3 %vm211_vm1, %v2955_v16  ;;  %6039 = vmatmul.msk.f32.vlgmr.msrb.gmra.mxu0 %vm211_vm1, %v2781_v54 }
 0x123   :  { %6041 = vmatmul.msk.f32.vlgmr.msrb.gmra.mxu1 %vm211_vm1, %v2839_v2  ;;  %6060 = vmatpush.msk.msrb.mxu3 %vm215_vm0, %v2060_v61  ;;  %v7875_v2 = vld [vmem:[#allocation27_spill] sm:$0xff]  ;;  %v7876_v61 = vld [vmem:[#allocation28_spill] sm:$0xff] }
 0x124   :  { %6054 = vmatpush.msk.msrb.mxu0 %vm215_vm0, %v2057_v50  ;;  %6056 = vmatpush.msk.msrb.mxu1 %vm215_vm0, %v2058_v41  ;;  %v2062_v41 = vadd.f32 %v7875_v2, %v6991_v0  ;;  %v2067_v50 = vadd.f32 %v7876_v61, %v7004_v29 }
 0x127   :  { %v3419_v11 = vpop.trf.xlu2 }
 0x129   :  { %v3129_v16 = vpop.trf.xlu0  ;;  %v3187_v54 = vpop.trf.xlu1 }
 0x12a   :  { %6051 = vmatmul.msk.f32.vlgmr.msra.gmra.mxu2 %vm211_vm1, %v3129_v16  ;;  %6047 = vmatmul.msk.f32.vlgmr.msra.gmra.mxu0 %vm211_vm1, %v3013_v7 }
 0x12b   :  { %6053 = vmatmul.msk.f32.vlgmr.msra.gmra.mxu3 %vm211_vm1, %v3187_v54  ;;  %6066 = vmatpush.msk.msra.mxu2 %vm215_vm0, %v2063_v20  ;;  %v2066_v20 = vadd.f32 %v7057_v27, %v7052_v47 }
 0x12c   :  { %6062 = vmatpush.msk.msra.mxu0 %vm215_vm0, %v2061_v63  ;;  %6068 = vmatpush.msk.msra.mxu3 %vm215_vm0, %v2064_v18  ;;  %v2065_v18 = vadd.f32 %v7044_v36, %v7039_v45 }
 0x12d   :  { %v7217_v63 = vpop.f32.mrf.mxu2 }
 0x12f   :  { %v3593_v32 = vpop.trf.xlu2 }
 0x130   :  { %v7219_v54 = vpop.f32.mrf.mxu1 }
 0x131   :  { %v3071_v16 = vpop.trf.xlu0  ;;  %v3361_v7 = vpop.trf.xlu1 }
 0x132   :  { %6049 = vmatmul.msk.f32.vlgmr.msra.gmra.mxu1 %vm211_vm1, %v3071_v16  ;;  %6059 = vmatmul.msk.f32.vlgmr.msrb.gmra.mxu2 %vm211_vm1, %v3361_v7 }
 0x133   :  { %6061 = vmatmul.msk.f32.vlgmr.msrb.gmra.mxu3 %vm211_vm1, %v3419_v11  ;;  %6064 = vmatpush.msk.msra.mxu1 %vm215_vm0, %v2062_v41  ;;  %v7222_v11 = vpop.f32.mrf.mxu0  ;;  %v7878_v41 = vsub.f32 %v6583_v4, %v6578_v1  ;;  %v7879_v1 = vsub.f32 %v6614_v21, %v6609_v19  ;;  %v7880_v4 = vsub.f32 %v6600_v12, %v6595_v9 }
 0x134   :  { %6074 = vmatpush.msk.msrb.mxu2 %vm215_vm0, %v2067_v50  ;;  %6076 = vmatpush.msk.msrb.mxu3 %vm215_vm0, %v2068_v34  ;;  %v7882_v9 = vsub.f32 %v6629_v30, %v6619_v24  ;;  %v7883_v12 = vsub.f32 %v6659_v48, %v6654_v46  ;;  %v7885_v30 = vsub.f32 %v6690_v10, %v6685_v3 }
 0x135   :  { %v7226_v34 = vpop.f32.mrf.mxu3  ;;  %v7886_v46 = vsub.f32 %v6704_v35, %v6699_v31  ;;  %v7888_v35 = vsub.f32 %v6731_v44, %v6726_v58  ;;  %v7891_v58 = vsub.f32 %v7863_v56, %v6783_v15 }
 0x137   :  { %v3535_v7 = vpop.trf.xlu2 }
 0x139   :  { %v3245_v16 = vpop.trf.xlu0  ;;  %v3303_v42 = vpop.trf.xlu1 }
 0x13a   :  { %6055 = vmatmul.msk.f32.vlgmr.msrb.gmra.mxu0 %vm211_vm1, %v3245_v16  ;;  %6057 = vmatmul.msk.f32.vlgmr.msrb.gmra.mxu1 %vm211_vm1, %v3303_v42  ;;  %v7234_v16 = vpop.f32.mrf.mxu2 }
 0x13b   :  { %6067 = vmatmul.msk.f32.vlgmr.msra.gmra.mxu2 %vm211_vm1, %v3593_v32  ;;  %6070 = vmatpush.msk.msrb.mxu0 %vm215_vm0, %v2065_v18  ;;  %v7237_v42 = vpop.f32.mrf.mxu0  ;;  %v7239_v32 = vpop.f32.mrf.mxu1  ;;  %v7881_v18 = vsub.f32 %v6645_v39, %v6640_v37  ;;  %v7884_v39 = vsub.f32 %v6674_v57, %v6664_v51  ;;  %v7887_v57 = vsub.f32 %v6717_v49, %v6712_v22 }
 0x13c   :  { %6072 = vmatpush.msk.msrb.mxu1 %vm215_vm0, %v2066_v20  ;;  %6082 = vmatpush.msk.msra.mxu2 %vm215_vm0, %v7878_v41  ;;  %v7889_v22 = vsub.f32 %v6743_v25, %v6738_v62 }
 0x13d   :  { %v7255_v20 = vpop.f32.mrf.mxu3 }
 0x13f   :  { %v3709_v47 = vpop.trf.xlu2 }
 0x141   :  { %v3651_v50 = vpop.trf.xlu0  ;;  %v3477_v27 = vpop.trf.xlu1 }
 0x142   :  { %6069 = vmatmul.msk.f32.vlgmr.msra.gmra.mxu3 %vm211_vm1, %v3651_v50  ;;  %6063 = vmatmul.msk.f32.vlgmr.msra.gmra.mxu0 %vm211_vm1, %v3477_v27  ;;  %v7258_v19 = vpop.f32.mrf.mxu2 }
 0x143   :  { %6065 = vmatmul.msk.f32.vlgmr.msra.gmra.mxu1 %vm211_vm1, %v3535_v7  ;;  %6084 = vmatpush.msk.msra.mxu3 %vm215_vm0, %v7879_v1  ;;  %v7260_v21 = vpop.f32.mrf.mxu0  ;;  %v7272_v37 = vpop.f32.mrf.mxu1 }
 0x144   :  { %6078 = vmatpush.msk.msra.mxu0 %vm215_vm0, %v7880_v4  ;;  %6080 = vmatpush.msk.msra.mxu1 %vm215_vm0, %v7881_v18 }
 0x147   :  { %v4147_v41 = vpop.trf.xlu2 }
 0x149   :  { %v3825_v27 = vpop.trf.xlu0  ;;  %v3883_v7 = vpop.trf.xlu1 }
 0x14a   :  { %6075 = vmatmul.msk.f32.vlgmr.msrb.gmra.mxu2 %vm211_vm1, %v3825_v27  ;;  %6071 = vmatmul.msk.f32.vlgmr.msrb.gmra.mxu0 %vm211_vm1, %v3709_v47  ;;  %v7278_v47 = vpop.f32.mrf.mxu3 }
 0x14b   :  { %6077 = vmatmul.msk.f32.vlgmr.msrb.gmra.mxu3 %vm211_vm1, %v3883_v7  ;;  %6090 = vmatpush.msk.msrb.mxu2 %vm215_vm0, %v7882_v9  ;;  %v7293_v48 = vpop.f32.mrf.mxu0  ;;  %v7890_v7 = vsub.f32 %v7861_v43, %v6751_v55  ;;  %v7892_v55 = vsub.f32 %v7862_v26, %v6771_v53  ;;  %v7893_v43 = vsub.f32 %v7864_v6, %v6796_v28  ;;  %v7896_v6 = vld [vmem:[#allocation11_spill] sm:$0xff] }
 0x14c   :  { %6086 = vmatpush.msk.msrb.mxu0 %vm215_vm0, %v7883_v12  ;;  %6092 = vmatpush.msk.msrb.mxu3 %vm215_vm0, %v7884_v39  ;;  %v7894_v53 = vsub.f32 %v7865_v5, %v6819_v17  ;;  %v7895_v28 = vsub.f32 %v7866_v52, %v6844_v40  ;;  %v7899_v52 = vld [vmem:[#allocation13_spill] sm:$0xff] }
 0x14d   :  { %v7281_v24 = vpop.f32.mrf.mxu2 }
 0x14f   :  { %v4321_v1 = vpop.trf.xlu2  ;;  %v7295_v51 = vpop.f32.mrf.mxu1 }
 0x151   :  { %v3767_v50 = vpop.trf.xlu0  ;;  %v4089_v4 = vpop.trf.xlu1 }
 0x152   :  { %6073 = vmatmul.msk.f32.vlgmr.msrb.gmra.mxu1 %vm211_vm1, %v3767_v50  ;;  %6083 = vmatmul.msk.f32.vlgmr.msra.gmra.mxu2 %vm211_vm1, %v4089_v4  ;;  %v7301_v18 = vpop.f32.mrf.mxu3 }
 0x153   :  { %6085 = vmatmul.msk.f32.vlgmr.msra.gmra.mxu3 %vm211_vm1, %v4147_v41  ;;  %6088 = vmatpush.msk.msrb.mxu1 %vm215_vm0, %v7885_v30  ;;  %v7897_v30 = vld [vmem:[#allocation10_spill] sm:$0xff] }
 0x154   :  { %6098 = vmatpush.msk.msra.mxu2 %vm215_vm0, %v7886_v46  ;;  %6100 = vmatpush.msk.msra.mxu3 %vm215_vm0, %v7887_v57  ;;  %v7898_v46 = vsub.f32 %v7896_v6, %v7897_v30 }
 0x155   :  { %v7306_v31 = vpop.f32.mrf.mxu2 }
 0x157   :  { %v7316_v49 = vpop.f32.mrf.mxu0  ;;  %v7318_v41 = vpop.f32.mrf.mxu1 }
 0x158   :  { %v4263_v3 = vpop.trf.xlu2 }
 0x159   :  { %v3973_v27 = vpop.trf.xlu0  ;;  %v4031_v10 = vpop.trf.xlu1 }
 0x15a   :  { %6079 = vmatmul.msk.f32.vlgmr.msra.gmra.mxu0 %vm211_vm1, %v3973_v27  ;;  %6081 = vmatmul.msk.f32.vlgmr.msra.gmra.mxu1 %vm211_vm1, %v4031_v10  ;;  %v7325_v44 = vpop.f32.mrf.mxu3  ;;  %v7900_v10 = vsub.f32 %v7867_v38, %v7899_v52 }
 0x15b   :  { %6091 = vmatmul.msk.f32.vlgmr.msrb.gmra.mxu2 %vm211_vm1, %v4321_v1  ;;  %6094 = vmatpush.msk.msra.mxu0 %vm215_vm0, %v7888_v35  ;;  %v7901_v35 = vld [vmem:[#allocation16_spill] sm:$0xff] }
 0x15c   :  { %6096 = vmatpush.msk.msra.mxu1 %vm215_vm0, %v7889_v22  ;;  %6106 = vmatpush.msk.msrb.mxu2 %vm215_vm0, %v7890_v7  ;;  %v7902_v22 = vld [vmem:[#allocation15_spill] sm:$0xff] }
 0x15d   :  { %v7903_v7 = vsub.f32 %v7901_v35, %v7902_v22  ;;  %v7913_v35 = vld [vmem:[#allocation24_spill] sm:$0xff]  ;;  %v7914_v22 = vld [vmem:[#allocation23_spill] sm:$0xff] }
 0x15e   :  { %v7337_v62 = vpop.f32.mrf.mxu2 }
 0x15f   :  { %v7339_v25 = vpop.f32.mrf.mxu0 }
 0x160   :  { %v4437_v12 = vpop.trf.xlu2  ;;  %v7345_v50 = vpop.f32.mrf.mxu1 }
 0x161   :  { %v4379_v9 = vpop.trf.xlu0 }
 0x162   :  { %v4205_v39 = vpop.trf.xlu1  ;;  %6093 = vmatmul.msk.f32.vlgmr.msrb.gmra.mxu3 %vm211_vm1, %v4379_v9  ;;  %6089 = vmatmul.msk.f32.vlgmr.msrb.gmra.mxu1 %vm211_vm1, %v4263_v3  ;;  %v7904_v9 = vsub.f32 %v7869_v59, %v6895_v14  ;;  %v7907_v59 = vld [vmem:[#allocation21_spill] sm:$0xff] }
 0x163   :  { %6087 = vmatmul.msk.f32.vlgmr.msrb.gmra.mxu0 %vm211_vm1, %v4205_v39  ;;  %6108 = vmatpush.msk.msrb.mxu3 %vm215_vm0, %v7891_v58 }
 0x164   :  { %6102 = vmatpush.msk.msrb.mxu0 %vm215_vm0, %v7892_v55  ;;  %6104 = vmatpush.msk.msrb.mxu1 %vm215_vm0, %v7893_v43 }
 0x165   :  { %v7348_v4 = vpop.f32.mrf.mxu3 }
 0x167   :  { %v7366_v57 = vpop.f32.mrf.mxu0 }
 0x168   :  { %v4843_v15 = vpop.trf.xlu2 }
 0x169   :  { %v4553_v1 = vpop.trf.xlu0 }
 0x16a   :  { %v4611_v56 = vpop.trf.xlu1  ;;  %6099 = vmatmul.msk.f32.vlgmr.msra.gmra.mxu2 %vm211_vm1, %v4553_v1  ;;  %v7905_v1 = vld [vmem:[#allocation18_spill] sm:$0xff] }
 0x16b   :  { %6095 = vmatmul.msk.f32.vlgmr.msra.gmra.mxu0 %vm211_vm1, %v4437_v12  ;;  %6101 = vmatmul.msk.f32.vlgmr.msra.gmra.mxu3 %vm211_vm1, %v4611_v56  ;;  %v7906_v14 = vsub.f32 %v7870_v33, %v7905_v1 }
 0x16c   :  { %6114 = vmatpush.msk.msra.mxu2 %vm215_vm0, %v7894_v53  ;;  %6110 = vmatpush.msk.msra.mxu0 %vm215_vm0, %v7895_v28  ;;  %v7910_v28 = vsub.f32 %v7872_v8, %v6943_v60  ;;  %v7911_v8 = vld [vmem:[#allocation25_spill] sm:$0xff] }
 0x16d   :  { %v7360_v26 = vpop.f32.mrf.mxu2  ;;  %6116 = vmatpush.msk.msra.mxu3 %vm215_vm0, %v7898_v46 }
 0x16e   :  { %v7373_v40 = vpop.f32.mrf.mxu3 }
 0x16f   :  { %v7368_v27 = vpop.f32.mrf.mxu1 }
 0x170   :  { %v5017_v17 = vpop.trf.xlu2 }
 0x171   :  { %v4495_v3 = vpop.trf.xlu0 }
 0x172   :  { %v4785_v5 = vpop.trf.xlu1  ;;  %6097 = vmatmul.msk.f32.vlgmr.msra.gmra.mxu1 %vm211_vm1, %v4495_v3 }
 0x173   :  { %6107 = vmatmul.msk.f32.vlgmr.msrb.gmra.mxu2 %vm211_vm1, %v4785_v5  ;;  %6109 = vmatmul.msk.f32.vlgmr.msrb.gmra.mxu3 %vm211_vm1, %v4843_v15  ;;  %v7908_v15 = vld [vmem:[#allocation20_spill] sm:$0xff] }
 0x174   :  { %6112 = vmatpush.msk.msra.mxu1 %vm215_vm0, %v7900_v10  ;;  %6122 = vmatpush.msk.msrb.mxu2 %vm215_vm0, %v7903_v7  ;;  %v7909_v56 = vsub.f32 %v7907_v59, %v7908_v15  ;;  %v7912_v10 = vsub.f32 %v7874_v23, %v7911_v8  ;;  %v7915_v7 = vsub.f32 %v7913_v35, %v7914_v22  ;;  %v7918_v59 = vld [vmem:[#allocation29_spill] sm:$0xff] }
 0x175   :  { %6124 = vmatpush.msk.msrb.mxu3 %vm215_vm0, %v7904_v9  ;;  %v7387_v12 = vpop.f32.mrf.mxu2  ;;  %v7919_v15 = vsub.f32 %v7877_v13, %v7918_v59 }
 0x176   :  { %v7404_v53 = vpop.f32.mrf.mxu3 }
 0x177   :  { %v7389_v39 = vpop.f32.mrf.mxu0  ;;  %v7391_v58 = vpop.f32.mrf.mxu1 }
 0x178   :  { %v4959_v38 = vpop.trf.xlu2 }
 0x179   :  { %v4669_v55 = vpop.trf.xlu0 }
 0x17a   :  { %v4727_v43 = vpop.trf.xlu1  ;;  %6103 = vmatmul.msk.f32.vlgmr.msrb.gmra.mxu0 %vm211_vm1, %v4669_v55  ;;  %v7916_v55 = vsub.f32 %v7875_v2, %v6991_v0  ;;  %v7917_v2 = vsub.f32 %v7876_v61, %v7004_v29  ;;  %v7922_v61 = vld [vmem:[#allocation31_spill] sm:$0xff] }
 0x17b   :  { %6105 = vmatmul.msk.f32.vlgmr.msrb.gmra.mxu1 %vm211_vm1, %v4727_v43  ;;  %6115 = vmatmul.msk.f32.vlgmr.msra.gmra.mxu2 %vm211_vm1, %v5017_v17 }
 0x17c   :  { %6118 = vmatpush.msk.msrb.mxu0 %vm215_vm0, %v7906_v14  ;;  %6120 = vmatpush.msk.msrb.mxu1 %vm215_vm0, %v7909_v56 }
 0x17d   :  { %6130 = vmatpush.msk.msra.mxu2 %vm215_vm0, %v7910_v28  ;;  %v7920_v28 = vsub.f32 %v7044_v36, %v7039_v45  ;;  %v7921_v45 = vld [vmem:[#allocation32_spill] sm:$0xff] }
 0x17e   :  { %v2240_v6 = vpop.f32.mrf.mxu2 }
 0x17f   :  { %v5815_v30 = vsub.f32 %v7217_v63, %v2240_v6  ;;  %v2124_v46 = vpop.f32.mrf.mxu0 }
 0x180   :  { %v2182_v33 = vpop.f32.mrf.mxu1  ;;  %v5813_v3 = vsub.f32 %v7222_v11, %v2124_v46  ;;  %v5133_v52 = vpop.trf.xlu2 }
 0x181   :  { %5848 = vst.msk [vmem:[%s7777_s4 + $0x4] sm:$0x3] %vm5845_vm2, %v5815_v30  ;;  %v5814_v17 = vsub.f32 %v7219_v54, %v2182_v33  ;;  %v5075_v5 = vpop.trf.xlu0 }
 0x182   :  { %v4901_v60 = vpop.trf.xlu1  ;;  %6117 = vmatmul.msk.f32.vlgmr.msra.gmra.mxu3 %vm211_vm1, %v5075_v5  ;;  %5846 = vst.msk [vmem:[%s7777_s4] sm:$0x3] %vm5845_vm2, %v5813_v3  ;;  %v7923_v3 = vsub.f32 %v7921_v45, %v7922_v61 }
 0x183   :  { %6111 = vmatmul.msk.f32.vlgmr.msra.gmra.mxu0 %vm211_vm1, %v4901_v60  ;;  %6113 = vmatmul.msk.f32.vlgmr.msra.gmra.mxu1 %vm211_vm1, %v4959_v38  ;;  %5847 = vst.msk [vmem:[%s7777_s4 + $0x2] sm:$0x3] %vm5845_vm2, %v5814_v17 }
 0x184   :  { %6132 = vmatpush.msk.msra.mxu3 %vm215_vm0, %v7912_v10  ;;  %6126 = vmatpush.msk.msra.mxu0 %vm215_vm0, %v7915_v7 }
 0x185   :  { %v2298_v9 = vpop.f32.mrf.mxu3  ;;  %6128 = vmatpush.msk.msra.mxu1 %vm215_vm0, %v7916_v55 }
 0x186   :  { %v5816_v38 = vsub.f32 %v7226_v34, %v2298_v9 }
 0x187   :  { %v2356_v23 = vpop.f32.mrf.mxu0 }
 0x188   :  { %5849 = vst.msk [vmem:[%s7777_s4 + $0x6] sm:$0x3] %vm5845_vm2, %v5816_v38  ;;  %v5817_v43 = vsub.f32 %v7237_v42, %v2356_v23  ;;  %v5539_v0 = vpop.trf.xlu2 }
 0x189   :  { %v5249_v1 = vpop.trf.xlu0 }
 0x18a   :  { %v5307_v14 = vpop.trf.xlu1  ;;  %6123 = vmatmul.msk.f32.vlgmr.msrb.gmra.mxu2 %vm211_vm1, %v5249_v1  ;;  %5850 = vst.msk [vmem:[%s7777_s4 + $0x8] sm:$0x3] %vm5845_vm2, %v5817_v43 }
 0x18b   :  { %6119 = vmatmul.msk.f32.vlgmr.msrb.gmra.mxu0 %vm211_vm1, %v5133_v52  ;;  %6125 = vmatmul.msk.f32.vlgmr.msrb.gmra.mxu3 %vm211_vm1, %v5307_v14 }
 0x18c   :  { %6138 = vmatpush.msk.msrb.mxu2 %vm215_vm0, %v7917_v2  ;;  %6140 = vmatpush.msk.msrb.mxu3 %vm215_vm0, %v7919_v15 }
 0x18d   :  { %v2472_v56 = vpop.f32.mrf.mxu2  ;;  %6134 = vmatpush.msk.msrb.mxu0 %vm215_vm0, %v7920_v28 }
 0x18e   :  { %v5819_v6 = vsub.f32 %v7234_v16, %v2472_v56  ;;  %v2530_v30 = vpop.f32.mrf.mxu3 }
 0x18f   :  { %v5820_v46 = vsub.f32 %v7255_v20, %v2530_v30  ;;  %v2414_v33 = vpop.f32.mrf.mxu1 }
 0x190   :  { %5852 = vst.msk [vmem:[%s7777_s4 + $0xc] sm:$0x3] %vm5845_vm2, %v5819_v6  ;;  %v5818_v29 = vsub.f32 %v7239_v32, %v2414_v33  ;;  %v5713_v17 = vpop.trf.xlu2 }
 0x191   :  { %5853 = vst.msk [vmem:[%s7777_s4 + $0xe] sm:$0x3] %vm5845_vm2, %v5820_v46  ;;  %v5191_v13 = vpop.trf.xlu0 }
 0x192   :  { %5851 = vst.msk [vmem:[%s7777_s4 + $0xa] sm:$0x3] %vm5845_vm2, %v5818_v29  ;;  %v5481_v36 = vpop.trf.xlu1  ;;  %6121 = vmatmul.msk.f32.vlgmr.msrb.gmra.mxu1 %vm211_vm1, %v5191_v13 }
 0x193   :  { %6131 = vmatmul.msk.f32.vlgmr.msra.gmra.mxu2 %vm211_vm1, %v5481_v36  ;;  %6133 = vmatmul.msk.f32.vlgmr.msra.gmra.mxu3 %vm211_vm1, %v5539_v0 }
 0x194   :  { %6136 = vmatpush.msk.msrb.mxu1 %vm215_vm0, %v7923_v3 }
 0x195   :  { %v2704_v5 = vpop.f32.mrf.mxu2 }
 0x196   :  { %v2762_v52 = vpop.f32.mrf.mxu3  ;;  %v5823_v60 = vsub.f32 %v7258_v19, %v2704_v5 }
 0x197   :  { %v5824_v8 = vsub.f32 %v7278_v47, %v2762_v52  ;;  %v2588_v10 = vpop.f32.mrf.mxu0  ;;  %v2646_v22 = vpop.f32.mrf.mxu1 }
 0x198   :  { %v5821_v35 = vsub.f32 %v7260_v21, %v2588_v10  ;;  %5856 = vst.msk [vmem:[%s7777_s4 + $0x14] sm:$0x3] %vm5845_vm2, %v5823_v60  ;;  %v5822_v7 = vsub.f32 %v7272_v37, %v2646_v22  ;;  %v5655_v43 = vpop.trf.xlu2 }
 0x199   :  { %v5365_v9 = vpop.trf.xlu0  ;;  %5857 = vst.msk [vmem:[%s7777_s4 + $0x16] sm:$0x3] %vm5845_vm2, %v5824_v8 }
 0x19a   :  { %v5423_v55 = vpop.trf.xlu1  ;;  %6127 = vmatmul.msk.f32.vlgmr.msra.gmra.mxu0 %vm211_vm1, %v5365_v9  ;;  %5854 = vst.msk [vmem:[%s7777_s4 + $0x10] sm:$0x3] %vm5845_vm2, %v5821_v35 }
 0x19b   :  { %6129 = vmatmul.msk.f32.vlgmr.msra.gmra.mxu1 %vm211_vm1, %v5423_v55  ;;  %6139 = vmatmul.msk.f32.vlgmr.msrb.gmra.mxu2 %vm211_vm1, %v5713_v17  ;;  %5855 = vst.msk [vmem:[%s7777_s4 + $0x12] sm:$0x3] %vm5845_vm2, %v5822_v7 }
 0x19e   :  { %v2936_v38 = vpop.f32.mrf.mxu2 }
 0x19f   :  { %v5827_v23 = vsub.f32 %v7281_v24, %v2936_v38  ;;  %v2820_v1 = vpop.f32.mrf.mxu0 }
 0x1a0   :  { %v2878_v14 = vpop.f32.mrf.mxu1  ;;  %v5825_v0 = vsub.f32 %v7293_v48, %v2820_v1 }
 0x1a1   :  { %5860 = vst.msk [vmem:[%s7777_s4 + $0x1c] sm:$0x3] %vm5845_vm2, %v5827_v23  ;;  %v5826_v2 = vsub.f32 %v7295_v51, %v2878_v14  ;;  %v5771_v59 = vpop.trf.xlu0 }
 0x1a2   :  { %v5597_v15 = vpop.trf.xlu1  ;;  %6141 = vmatmul.msk.f32.vlgmr.msrb.gmra.mxu3 %vm211_vm1, %v5771_v59  ;;  %5858 = vst.msk [vmem:[%s7777_s4 + $0x18] sm:$0x3] %vm5845_vm2, %v5825_v0 }
 0x1a3   :  { %6135 = vmatmul.msk.f32.vlgmr.msrb.gmra.mxu0 %vm211_vm1, %v5597_v15  ;;  %6137 = vmatmul.msk.f32.vlgmr.msrb.gmra.mxu1 %vm211_vm1, %v5655_v43  ;;  %5859 = vst.msk [vmem:[%s7777_s4 + $0x1a] sm:$0x3] %vm5845_vm2, %v5826_v2 }
 0x1a5   :  { %v2994_v56 = vpop.f32.mrf.mxu3 }
 0x1a6   :  { %v5828_v28 = vsub.f32 %v7301_v18, %v2994_v56 }
 0x1a7   :  { %v3052_v6 = vpop.f32.mrf.mxu0 }
 0x1a8   :  { %5861 = vst.msk [vmem:[%s7777_s4 + $0x1e] sm:$0x3] %vm5845_vm2, %v5828_v28  ;;  %v5829_v30 = vsub.f32 %v7316_v49, %v3052_v6 }
 0x1aa   :  { %5862 = vst.msk [vmem:[%s7777_s4 + $0x20] sm:$0x3] %vm5845_vm2, %v5829_v30 }
 0x1ad   :  { %v3168_v46 = vpop.f32.mrf.mxu2 }
 0x1ae   :  { %v5831_v33 = vsub.f32 %v7306_v31, %v3168_v46  ;;  %v3226_v29 = vpop.f32.mrf.mxu3 }
 0x1af   :  { %v5832_v13 = vsub.f32 %v7325_v44, %v3226_v29  ;;  %v3110_v36 = vpop.f32.mrf.mxu1 }
 0x1b0   :  { %5864 = vst.msk [vmem:[%s7777_s4 + $0x24] sm:$0x3] %vm5845_vm2, %v5831_v33  ;;  %v5830_v45 = vsub.f32 %v7318_v41, %v3110_v36 }
 0x1b1   :  { %5865 = vst.msk [vmem:[%s7777_s4 + $0x26] sm:$0x3] %vm5845_vm2, %v5832_v13 }
 0x1b2   :  { %5863 = vst.msk [vmem:[%s7777_s4 + $0x22] sm:$0x3] %vm5845_vm2, %v5830_v45 }
 0x1b5   :  { %v3400_v61 = vpop.f32.mrf.mxu2 }
 0x1b6   :  { %v3458_v3 = vpop.f32.mrf.mxu3  ;;  %v5835_v17 = vsub.f32 %v7337_v62, %v3400_v61 }
 0x1b7   :  { %v5836_v5 = vsub.f32 %v7348_v4, %v3458_v3  ;;  %v3284_v52 = vpop.f32.mrf.mxu0  ;;  %v3342_v8 = vpop.f32.mrf.mxu1 }
 0x1b8   :  { %v5833_v60 = vsub.f32 %v7339_v25, %v3284_v52  ;;  %5868 = vst.msk [vmem:[%s7777_s4 + $0x2c] sm:$0x3] %vm5845_vm2, %v5835_v17  ;;  %v5834_v10 = vsub.f32 %v7345_v50, %v3342_v8 }
 0x1b9   :  { %5869 = vst.msk [vmem:[%s7777_s4 + $0x2e] sm:$0x3] %vm5845_vm2, %v5836_v5 }
 0x1ba   :  { %5866 = vst.msk [vmem:[%s7777_s4 + $0x28] sm:$0x3] %vm5845_vm2, %v5833_v60 }
 0x1bb   :  { %5867 = vst.msk [vmem:[%s7777_s4 + $0x2a] sm:$0x3] %vm5845_vm2, %v5834_v10 }
 0x1be   :  { %v3632_v35 = vpop.f32.mrf.mxu2 }
 0x1bf   :  { %v5839_v22 = vsub.f32 %v7360_v26, %v3632_v35  ;;  %v3516_v7 = vpop.f32.mrf.mxu0 }
 0x1c0   :  { %v3574_v9 = vpop.f32.mrf.mxu1  ;;  %v5837_v55 = vsub.f32 %v7366_v57, %v3516_v7 }
 0x1c1   :  { %5872 = vst.msk [vmem:[%s7777_s4 + $0x34] sm:$0x3] %vm5845_vm2, %v5839_v22  ;;  %v5838_v38 = vsub.f32 %v7368_v27, %v3574_v9 }
 0x1c2   :  { %5870 = vst.msk [vmem:[%s7777_s4 + $0x30] sm:$0x3] %vm5845_vm2, %v5837_v55 }
 0x1c3   :  { %5871 = vst.msk [vmem:[%s7777_s4 + $0x32] sm:$0x3] %vm5845_vm2, %v5838_v38 }
 0x1c5   :  { %v3690_v23 = vpop.f32.mrf.mxu3 }
 0x1c6   :  { %v5840_v43 = vsub.f32 %v7373_v40, %v3690_v23 }
 0x1c7   :  { %v3748_v1 = vpop.f32.mrf.mxu0 }
 0x1c8   :  { %5873 = vst.msk [vmem:[%s7777_s4 + $0x36] sm:$0x3] %vm5845_vm2, %v5840_v43  ;;  %v5841_v14 = vsub.f32 %v7389_v39, %v3748_v1 }
 0x1ca   :  { %5874 = vst.msk [vmem:[%s7777_s4 + $0x38] sm:$0x3] %vm5845_vm2, %v5841_v14 }
 0x1cd   :  { %v3864_v0 = vpop.f32.mrf.mxu2 }
 0x1ce   :  { %v5843_v2 = vsub.f32 %v7387_v12, %v3864_v0  ;;  %v3922_v59 = vpop.f32.mrf.mxu3 }
 0x1cf   :  { %v5844_v15 = vsub.f32 %v7404_v53, %v3922_v59  ;;  %v3806_v56 = vpop.f32.mrf.mxu1 }
 0x1d0   :  { %5876 = vst.msk [vmem:[%s7777_s4 + $0x3c] sm:$0x3] %vm5845_vm2, %v5843_v2  ;;  %v5842_v28 = vsub.f32 %v7391_v58, %v3806_v56 }
 0x1d1   :  { %5877 = vst.msk [vmem:[%s7777_s4 + $0x3e] sm:$0x3] %vm5845_vm2, %v5844_v15 }
 0x1d2   :  { %5875 = vst.msk [vmem:[%s7777_s4 + $0x3a] sm:$0x3] %vm5845_vm2, %v5842_v28 }
 0x1d5   :  { %v4128_v6 = vpop.f32.mrf.mxu2 }
 0x1d6   :  { %v4186_v30 = vpop.f32.mrf.mxu3  ;;  %v5880_v46 = vadd.f32 %v4128_v6, %v7217_v63 }
 0x1d7   :  { %v5881_v33 = vadd.f32 %v4186_v30, %v7226_v34  ;;  %v4012_v29 = vpop.f32.mrf.mxu0  ;;  %v4070_v36 = vpop.f32.mrf.mxu1 }
 0x1d8   :  { %v5878_v13 = vadd.f32 %v4012_v29, %v7222_v11  ;;  %5912 = vst.msk [vmem:[%s7778_s5 + $0x4] sm:$0x3] %vm5845_vm2, %v5880_v46  ;;  %v5879_v45 = vadd.f32 %v4070_v36, %v7219_v54 }
 0x1d9   :  { %5913 = vst.msk [vmem:[%s7778_s5 + $0x6] sm:$0x3] %vm5845_vm2, %v5881_v33 }
 0x1da   :  { %5910 = vst.msk [vmem:[%s7778_s5] sm:$0x3] %vm5845_vm2, %v5878_v13 }
 0x1db   :  { %5911 = vst.msk [vmem:[%s7778_s5 + $0x2] sm:$0x3] %vm5845_vm2, %v5879_v45 }
 0x1de   :  { %v4360_v63 = vpop.f32.mrf.mxu2 }
 0x1df   :  { %v5884_v11 = vadd.f32 %v4360_v63, %v7234_v16  ;;  %v4302_v54 = vpop.f32.mrf.mxu1 }
 0x1e0   :  { %v4244_v34 = vpop.f32.mrf.mxu0  ;;  %v5883_v3 = vadd.f32 %v4302_v54, %v7239_v32 }
 0x1e1   :  { %5916 = vst.msk [vmem:[%s7778_s5 + $0xc] sm:$0x3] %vm5845_vm2, %v5884_v11  ;;  %v5882_v61 = vadd.f32 %v4244_v34, %v7237_v42 }
 0x1e2   :  { %5915 = vst.msk [vmem:[%s7778_s5 + $0xa] sm:$0x3] %vm5845_vm2, %v5883_v3 }
 0x1e3   :  { %5914 = vst.msk [vmem:[%s7778_s5 + $0x8] sm:$0x3] %vm5845_vm2, %v5882_v61 }
 0x1e5   :  { %v4418_v16 = vpop.f32.mrf.mxu3 }
 0x1e6   :  { %v5885_v17 = vadd.f32 %v4418_v16, %v7255_v20 }
 0x1e8   :  { %5917 = vst.msk [vmem:[%s7778_s5 + $0xe] sm:$0x3] %vm5845_vm2, %v5885_v17  ;;  %v4476_v42 = vpop.f32.mrf.mxu0 }
 0x1e9   :  { %v5886_v32 = vadd.f32 %v4476_v42, %v7260_v21 }
 0x1eb   :  { %5918 = vst.msk [vmem:[%s7778_s5 + $0x10] sm:$0x3] %vm5845_vm2, %v5886_v32 }
 0x1ed   :  { %v4592_v5 = vpop.f32.mrf.mxu2 }
 0x1ee   :  { %v5888_v52 = vadd.f32 %v4592_v5, %v7258_v19  ;;  %v4650_v60 = vpop.f32.mrf.mxu3 }
 0x1ef   :  { %v5889_v8 = vadd.f32 %v4650_v60, %v7278_v47  ;;  %v4534_v20 = vpop.f32.mrf.mxu1 }
 0x1f0   :  { %5920 = vst.msk [vmem:[%s7778_s5 + $0x14] sm:$0x3] %vm5845_vm2, %v5888_v52  ;;  %v5887_v10 = vadd.f32 %v4534_v20, %v7272_v37 }
 0x1f1   :  { %5921 = vst.msk [vmem:[%s7778_s5 + $0x16] sm:$0x3] %vm5845_vm2, %v5889_v8 }
 0x1f2   :  { %5919 = vst.msk [vmem:[%s7778_s5 + $0x12] sm:$0x3] %vm5845_vm2, %v5887_v10 }
 0x1f6   :  { %v4824_v19 = vpop.f32.mrf.mxu2  ;;  %v4882_v21 = vpop.f32.mrf.mxu3 }
 0x1f7   :  { %v5892_v47 = vadd.f32 %v4824_v19, %v7281_v24  ;;  %v5893_v35 = vadd.f32 %v4882_v21, %v7301_v18  ;;  %v4708_v22 = vpop.f32.mrf.mxu0 }
 0x1f8   :  { %v5890_v7 = vadd.f32 %v4708_v22, %v7293_v48  ;;  %v4766_v37 = vpop.f32.mrf.mxu1 }
 0x1f9   :  { %5924 = vst.msk [vmem:[%s7778_s5 + $0x1c] sm:$0x3] %vm5845_vm2, %v5892_v47  ;;  %v5891_v9 = vadd.f32 %v4766_v37, %v7295_v51 }
 0x1fa   :  { %5925 = vst.msk [vmem:[%s7778_s5 + $0x1e] sm:$0x3] %vm5845_vm2, %v5893_v35 }
 0x1fb   :  { %5922 = vst.msk [vmem:[%s7778_s5 + $0x18] sm:$0x3] %vm5845_vm2, %v5890_v7 }
 0x1fc   :  { %5923 = vst.msk [vmem:[%s7778_s5 + $0x1a] sm:$0x3] %vm5845_vm2, %v5891_v9 }
 0x1fe   :  { %v5056_v24 = vpop.f32.mrf.mxu2 }
 0x1ff   :  { %v5896_v48 = vadd.f32 %v5056_v24, %v7306_v31 }
 0x200   :  { %v4940_v18 = vpop.f32.mrf.mxu0  ;;  %v4998_v51 = vpop.f32.mrf.mxu1 }
 0x201   :  { %5928 = vst.msk [vmem:[%s7778_s5 + $0x24] sm:$0x3] %vm5845_vm2, %v5896_v48  ;;  %v5894_v55 = vadd.f32 %v4940_v18, %v7316_v49  ;;  %v5895_v38 = vadd.f32 %v4998_v51, %v7318_v41 }
 0x203   :  { %5926 = vst.msk [vmem:[%s7778_s5 + $0x20] sm:$0x3] %vm5845_vm2, %v5894_v55 }
 0x204   :  { %5927 = vst.msk [vmem:[%s7778_s5 + $0x22] sm:$0x3] %vm5845_vm2, %v5895_v38 }
 0x205   :  { %v5114_v31 = vpop.f32.mrf.mxu3 }
 0x206   :  { %v5897_v23 = vadd.f32 %v5114_v31, %v7325_v44 }
 0x208   :  { %5929 = vst.msk [vmem:[%s7778_s5 + $0x26] sm:$0x3] %vm5845_vm2, %v5897_v23  ;;  %v5172_v49 = vpop.f32.mrf.mxu0 }
 0x209   :  { %v5898_v41 = vadd.f32 %v5172_v49, %v7339_v25 }
 0x20b   :  { %5930 = vst.msk [vmem:[%s7778_s5 + $0x28] sm:$0x3] %vm5845_vm2, %v5898_v41 }
 0x20d   :  { %v5288_v43 = vpop.f32.mrf.mxu2 }
 0x20e   :  { %v5900_v1 = vadd.f32 %v5288_v43, %v7337_v62  ;;  %v5346_v14 = vpop.f32.mrf.mxu3 }
 0x20f   :  { %v5901_v0 = vadd.f32 %v5346_v14, %v7348_v4  ;;  %v5230_v44 = vpop.f32.mrf.mxu1 }
 0x210   :  { %5932 = vst.msk [vmem:[%s7778_s5 + $0x2c] sm:$0x3] %vm5845_vm2, %v5900_v1  ;;  %v5899_v2 = vadd.f32 %v5230_v44, %v7345_v50 }
 0x211   :  { %5933 = vst.msk [vmem:[%s7778_s5 + $0x2e] sm:$0x3] %vm5845_vm2, %v5901_v0 }
 0x212   :  { %5931 = vst.msk [vmem:[%s7778_s5 + $0x2a] sm:$0x3] %vm5845_vm2, %v5899_v2 }
 0x216   :  { %v5520_v62 = vpop.f32.mrf.mxu2  ;;  %v5578_v25 = vpop.f32.mrf.mxu3 }
 0x217   :  { %v5904_v4 = vadd.f32 %v5520_v62, %v7360_v26  ;;  %v5905_v59 = vadd.f32 %v5578_v25, %v7373_v40  ;;  %v5404_v15 = vpop.f32.mrf.mxu0 }
 0x218   :  { %v5902_v56 = vadd.f32 %v5404_v15, %v7366_v57  ;;  %v5462_v50 = vpop.f32.mrf.mxu1 }
 0x219   :  { %5936 = vst.msk [vmem:[%s7778_s5 + $0x34] sm:$0x3] %vm5845_vm2, %v5904_v4  ;;  %v5903_v28 = vadd.f32 %v5462_v50, %v7368_v27 }
 0x21a   :  { %5937 = vst.msk [vmem:[%s7778_s5 + $0x36] sm:$0x3] %vm5845_vm2, %v5905_v59 }
 0x21b   :  { %5934 = vst.msk [vmem:[%s7778_s5 + $0x30] sm:$0x3] %vm5845_vm2, %v5902_v56 }
 0x21c   :  { %5935 = vst.msk [vmem:[%s7778_s5 + $0x32] sm:$0x3] %vm5845_vm2, %v5903_v28 }
 0x21e   :  { %v5752_v26 = vpop.f32.mrf.mxu2 }
 0x21f   :  { %v5908_v57 = vadd.f32 %v5752_v26, %v7387_v12 }
 0x220   :  { %v5636_v40 = vpop.f32.mrf.mxu0  ;;  %v5694_v27 = vpop.f32.mrf.mxu1 }
 0x221   :  { %5940 = vst.msk [vmem:[%s7778_s5 + $0x3c] sm:$0x3] %vm5845_vm2, %v5908_v57  ;;  %v5906_v6 = vadd.f32 %v5636_v40, %v7389_v39  ;;  %v5907_v30 = vadd.f32 %v5694_v27, %v7391_v58 }
 0x223   :  { %5938 = vst.msk [vmem:[%s7778_s5 + $0x38] sm:$0x3] %vm5845_vm2, %v5906_v6 }
 0x224   :  { %5939 = vst.msk [vmem:[%s7778_s5 + $0x3a] sm:$0x3] %vm5845_vm2, %v5907_v30 }
 0x225   :  { %v5810_v12 = vpop.f32.mrf.mxu3 }
 0x226   :  { %v5909_v46 = vadd.f32 %v5810_v12, %v7404_v53 }
 0x228   :  { %5941 = vst.msk [vmem:[%s7778_s5 + $0x3e] sm:$0x3] %vm5845_vm2, %v5909_v46 }

</bundles_post_ra>
